<compile_context>
chip_gen: v7x
topology: tpu7x:2x2x1
jax: 0.10.0
libtpu: 0.0.40
codegen_flags: <defaults>
</compile_context>

<pallas_src>
import functools

import numpy as np
import jax
import jax.numpy as jnp
from jax.experimental import pallas as pl
from jax.experimental.pallas import tpu as pltpu  # noqa: F401  (TPU backend)

# ---------------- configuration (small but structurally faithful) -------------
B = 2
LAT_REF = 8          # latent_dim_ref
LAT_SCI = 16         # latent_dim_sci == channel count fed to the conv stack
LAT_EMB = 4          # latent_dim_emb_ref
CHANNELS = 3
H_CH = [32, 24, 8]   # h_channels
K = 4                # kernel_size
EPS = 1e-5
# x carries LAT_REF + (LAT_SCI - LAT_EMB) channels so hstack(z_emb, z_sci) has
# exactly LAT_SCI channels, as the first conv expects.
X_CH = LAT_REF + (LAT_SCI - LAT_EMB)

# Reproduce the PyTorch __init__ stride/pad rule (final conv reuses last values).
_strides, _pads = [], []
_in = LAT_SCI
for _out in H_CH:
    _pads.append(0 if _in == LAT_SCI else 1)
    _strides.append(1 if _in == LAT_SCI else 2)
    _in = _out
_strides.append(_strides[-1])
_pads.append(_pads[-1])


def _spatial_sizes():
    sizes, h = [], 1
    for s, p in zip(_strides, _pads):
        h = (h - 1) * s - 2 * p + K
        sizes.append(h)
    return sizes


OUT_HW = _spatial_sizes()[-1]   # 32 for this config

# Layer-0 placement matrix: for a 1x1 input, the im2col patch row (kh,kw)
# contributes only to output pixel (K-1-kh, K-1-kw).  Constant, built once.
_P0 = np.zeros((K * K, K * K), np.float32)
for _kh in range(K):
    for _kw in range(K):
        _P0[_kh * K + _kw, (K - 1 - _kh) * K + (K - 1 - _kw)] = 1.0


# ---------------------------- Pallas kernels ----------------------------------
def _conv_bn_relu_kernel(w_ref, a_ref, g_ref, b_ref, o_ref, *, inv_m, eps):
    """Fused (Cout,KK) @ (KK,M) + train-mode BatchNorm over lanes + ReLU.

    Channel-major: pixels on lanes -> the single store is lane-dense.  The
    whole output block lives in VMEM (grid=(1,)), so batch statistics are exact
    and computed on the f32 accumulator (no extra HBM round-trip).  The conv
    bias is intentionally absent: a mean-subtracting BatchNorm annihilates it.
    gamma is folded into the rsqrt scale ((Cout,1) VPU work, not (Cout,M)).
    """
    y = jnp.dot(w_ref[...], a_ref[...], preferred_element_type=jnp.float32)
    mean = jnp.sum(y, axis=1, keepdims=True) * inv_m
    diff = y - mean
    var = jnp.sum(diff * diff, axis=1, keepdims=True) * inv_m
    scale = jax.lax.rsqrt(var + eps) * g_ref[...]
    o_ref[...] = jnp.maximum(diff * scale + b_ref[...], 0.0)


def _final_conv_add_tanh_kernel(w_ref, a_ref, bias_ref, ref_ref, o_ref):
    """Final ConvTranspose: (Cout,KK) @ (KK, B*OH*OW) + bias + ref-add + tanh.

    Channels on sublanes, pixels on lanes -> lane-dense (2048-lane) store.  The
    generator_ref image is added to channel 0 (row 0) and tanh (EUP) is applied
    in the same epilogue.
    """
    y = jnp.dot(w_ref[...], a_ref[...],
                preferred_element_type=jnp.float32) + bias_ref[...]
    row = jax.lax.broadcasted_iota(jnp.int32, y.shape, 0)
    y = y + jnp.where(row == 0, ref_ref[...], 0.0)
    o_ref[...] = jnp.tanh(y)


# ---------------------------- wrappers -----------------------------------------
def pallas_conv_bn_relu(w_t, a_t, gamma, beta, eps=EPS):
    """One fused hidden layer: matmul + BatchNorm(batch stats) + ReLU.

    Full-array blocks (block_shape == array dims bypasses the (8,128) rule);
    bf16 MXU operands, f32 accumulate/epilogue, f32 store.
    """
    Cout, Kd = w_t.shape
    M = a_t.shape[1]
    kern = functools.partial(_conv_bn_relu_kernel, inv_m=1.0 / M, eps=eps)
    return pl.pallas_call(
        kern,
        out_shape=jax.ShapeDtypeStruct((Cout, M), jnp.float32),
        grid=(1,),
        in_specs=[pl.BlockSpec((Cout, Kd), lambda i: (0, 0)),
                  pl.BlockSpec((Kd, M), lambda i: (0, 0)),
                  pl.BlockSpec((Cout, 1), lambda i: (0, 0)),
                  pl.BlockSpec((Cout, 1), lambda i: (0, 0))],
        out_specs=pl.BlockSpec((Cout, M), lambda i: (0, 0)),
    )(w_t.astype(jnp.bfloat16), a_t.astype(jnp.bfloat16),
      gamma.reshape(Cout, 1).astype(jnp.float32),
      beta.reshape(Cout, 1).astype(jnp.float32))


def pallas_final_conv_add_tanh(w_t, a_t, bias, ref_row):
    """Final conv (channel-major) + bias + ref-channel add + tanh."""
    Cout, Kd = w_t.shape
    M = a_t.shape[1]
    return pl.pallas_call(
        _final_conv_add_tanh_kernel,
        out_shape=jax.ShapeDtypeStruct((Cout, M), jnp.float32),
        grid=(1,),
        in_specs=[pl.BlockSpec((Cout, Kd), lambda i: (0, 0)),
                  pl.BlockSpec((Kd, M), lambda i: (0, 0)),
                  pl.BlockSpec((Cout, 1), lambda i: (0, 0)),
                  pl.BlockSpec((1, M), lambda i: (0, 0))],
        out_specs=pl.BlockSpec((Cout, M), lambda i: (0, 0)),
    )(w_t.astype(jnp.bfloat16), a_t.astype(jnp.bfloat16),
      bias.reshape(Cout, 1).astype(jnp.float32),
      ref_row.reshape(1, M).astype(jnp.float32))


# ---------------------------- XLA glue (no transposes) --------------------------
def _im2col_cm(h4, k, stride, pad):
    """Channel-major ConvTranspose2d lowering: dilate/pad/slice/stack.

    h4: (Cin, B, H, W).  Returns A_T of shape (K*K*Cin, B*OH*OW) with rows
    ordered (kh, kw, cin) and columns ordered (b, oh, ow) — no transposes, so
    nothing on the activation path is relaid out in HBM.
    """
    Cin, Bn, H, W = h4.shape
    if stride > 1:
        Hd = (H - 1) * stride + 1
        xd = jnp.zeros((Cin, Bn, Hd, Hd), h4.dtype)
        xd = xd.at[:, :, ::stride, ::stride].set(h4)
    else:
        Hd = H
        xd = h4
    ep = k - 1 - pad
    xp = jnp.pad(xd, ((0, 0), (0, 0), (ep, ep), (ep, ep)))
    OH = Hd + 2 * ep - k + 1
    cols = [xp[:, :, kh:kh + OH, kw:kw + OH] for kh in range(k) for kw in range(k)]
    patches = jnp.stack(cols, axis=0)                    # (K*K, Cin, B, OH, OH)
    return patches.reshape(k * k * Cin, Bn * OH * OH), OH


def _w_t(w, k):
    """PyTorch ConvTranspose2d weight (Cin, Cout, k, k) -> (Cout, k*k*Cin).

    Columns ordered (kh, kw, cin), spatially flipped, matching A_T's rows.
    Tiny (<=3 KiB), off the activation critical path.
    """
    return jnp.transpose(w[:, :, ::-1, ::-1], (1, 2, 3, 0)).reshape(
        w.shape[1], k * k * w.shape[0])


# ---------------------------- model --------------------------------------------
def init_params(key):
    keys = jax.random.split(key, 16)
    p = {}
    p["W_w"] = jax.random.normal(keys[0], (LAT_REF, LAT_EMB), jnp.float32) * 0.1
    p["W_b"] = jax.random.normal(keys[1], (LAT_EMB,), jnp.float32) * 0.1
    in_ch = LAT_SCI
    for i, out_ch in enumerate(H_CH + [CHANNELS]):
        p[f"conv{i}_w"] = jax.random.normal(keys[2 + 2 * i], (in_ch, out_ch, K, K),
                                            jnp.float32) * 0.05
        p[f"conv{i}_b"] = jax.random.normal(keys[3 + 2 * i], (out_ch,),
                                            jnp.float32) * 0.05
        if i < len(H_CH):
            p[f"bn{i}_g"] = jnp.ones((out_ch,), jnp.float32)
            p[f"bn{i}_b"] = jnp.zeros((out_ch,), jnp.float32)
        in_ch = out_ch
    # synthetic deterministic generator_ref: linear decoder z_ref -> (B,1,OUT,OUT)
    p["ref_w"] = jax.random.normal(keys[12], (LAT_REF, OUT_HW * OUT_HW), jnp.float32) * 0.1
    p["ref_b"] = jax.random.normal(keys[13], (OUT_HW * OUT_HW,), jnp.float32) * 0.1
    return p


@jax.jit
def forward(params, x):
    Bn = x.shape[0]
    z_ref = x[:, :LAT_REF, 0, 0]                                        # (B, LAT_REF)
    # self.W: 2x8 @ 8x4 — plain XLA dot (a Pallas launch here is pure overhead).
    z_emb = jnp.dot(z_ref, params["W_w"],
                    precision=jax.lax.Precision.HIGHEST) + params["W_b"]
    z_sci = x[:, LAT_REF:, 0, 0]
    z = jnp.concatenate([z_emb, z_sci], axis=1)                         # (B, LAT_SCI)

    # Layer 0: 1x1 spatial input.  Build A_T with one constant-placement einsum
    # (no dilate/pad/slice/stack glue), then the fused channel-major kernel.
    p0 = jnp.asarray(_P0)
    a_t = jnp.einsum("kp,bc->kcbp", p0, z).reshape(K * K * LAT_SCI, Bn * K * K)
    h_t = pallas_conv_bn_relu(_w_t(params["conv0_w"], K), a_t,
                              params["bn0_g"], params["bn0_b"])
    h4 = h_t.reshape(H_CH[0], Bn, K, K)                                 # (C, B, H, W)

    # Hidden layers 1..: one fused channel-major Pallas kernel each.
    for i in range(1, len(H_CH)):
        a_t, OH = _im2col_cm(h4, K, _strides[i], _pads[i])
        h_t = pallas_conv_bn_relu(_w_t(params[f"conv{i}_w"], K), a_t,
                                  params[f"bn{i}_g"], params[f"bn{i}_b"])
        h4 = h_t.reshape(H_CH[i], Bn, OH, OH)

    # Final layer: lane-dense (3, B*32*32) store with ref-channel add + tanh fused.
    i = len(H_CH)
    a_t, OH = _im2col_cm(h4, K, _strides[i], _pads[i])

    # x_ref = generator_ref(z_ref).detach() — external module, synthesized as a
    # tiny linear decoder; kept in XLA and fused into the final epilogue.
    x_ref = jnp.dot(z_ref, params["ref_w"],
                    precision=jax.lax.Precision.HIGHEST) + params["ref_b"]
    x_ref = jax.lax.stop_gradient(x_ref)                                # (B, OH*OH)
    ref_row = x_ref.reshape(1, Bn * OH * OH)

    out_t = pallas_final_conv_add_tanh(_w_t(params[f"conv{i}_w"], K), a_t,
                                       params[f"conv{i}_b"], ref_row)
    # out_t[c, b*OH*OH + h*OH + w]  ->  (B, C, OH, OH)
    return jnp.transpose(out_t.reshape(CHANNELS, Bn, OH, OH), (1, 0, 2, 3))


# ---------------------------- pure-JAX reference --------------------------------
def _ref_conv_transpose(x_nchw, w, b, stride, pad, k, mm_dtype):
    w_conv = jnp.transpose(w[:, :, ::-1, ::-1], (1, 0, 2, 3))   # OIHW, spatially flipped
    out = jax.lax.conv_general_dilated(
        x_nchw.astype(mm_dtype), w_conv.astype(mm_dtype), window_strides=(1, 1),
        padding=[(k - 1 - pad, k - 1 - pad)] * 2,
        lhs_dilation=(stride, stride),
        dimension_numbers=("NCHW", "OIHW", "NCHW"),
        preferred_element_type=jnp.float32,
        precision=jax.lax.Precision.HIGHEST)
    return out + b.reshape(1, -1, 1, 1)


def ref_forward(params, x, mm_dtype=jnp.float32):
    """Faithful module reference (ConvTranspose+bias, train-mode BN, ReLU, tanh).

    mm_dtype controls only the conv matmul operand precision so the Pallas path
    (bf16 MXU operands, f32 accumulate) can be checked tightly and the full-f32
    path loosely.
    """
    Bn = x.shape[0]
    z_ref = x[:, :LAT_REF, 0, 0]
    z_emb = jnp.dot(z_ref, params["W_w"], precision="highest") + params["W_b"]
    z_sci = x[:, LAT_REF:, 0, 0]
    h = jnp.concatenate([z_emb, z_sci], axis=1).reshape(Bn, LAT_SCI, 1, 1)
    for i in range(len(H_CH)):
        h = _ref_conv_transpose(h, params[f"conv{i}_w"], params[f"conv{i}_b"],
                                _strides[i], _pads[i], K, mm_dtype)
        mean = jnp.mean(h, axis=(0, 2, 3), keepdims=True)
        var = jnp.mean((h - mean) ** 2, axis=(0, 2, 3), keepdims=True)
        h = (h - mean) / jnp.sqrt(var + EPS)
        h = h * params[f"bn{i}_g"].reshape(1, -1, 1, 1) + params[f"bn{i}_b"].reshape(1, -1, 1, 1)
        h = jnp.maximum(h, 0.0)
    i = len(H_CH)
    x_sci = _ref_conv_transpose(h, params[f"conv{i}_w"], params[f"conv{i}_b"],
                                _strides[i], _pads[i], K, mm_dtype)
    x_ref = (jnp.dot(z_ref, params["ref_w"], precision="highest")
             + params["ref_b"]).reshape(Bn, 1, OUT_HW, OUT_HW)
    x_sci = x_sci.at[:, 0].add(x_ref[:, 0])
    return jnp.tanh(x_sci)


# ---------------------------- main ----------------------------------------------
if __name__ == "__main__":
    key = jax.random.PRNGKey(0)
    pkey, xkey = jax.random.split(key)
    params = init_params(pkey)
    x = jax.random.normal(xkey, (B, X_CH, 1, 1), jnp.float32)

    out = forward(params, x)
    out = jax.block_until_ready(out)
    assert out.shape == (B, CHANNELS, OUT_HW, OUT_HW), out.shape

    # Tight structural check vs a reference using the same bf16 matmul-operand
    # precision (f32 accumulation) as the Pallas kernels.
    ref_match = ref_forward(params, x, mm_dtype=jnp.bfloat16)
    err_match = float(jnp.max(jnp.abs(out - ref_match)))
    assert err_match < 2e-3, f"mismatch vs precision-matched reference: {err_match}"

    # Coarse sanity bound vs the full-f32 reference (gap is the bf16 operand
    # rounding through 4 conv layers; structure errors would be O(0.3+)).
    ref_f32 = ref_forward(params, x, mm_dtype=jnp.float32)
    err_f32 = float(jnp.max(jnp.abs(out - ref_f32)))
    assert err_f32 < 1e-1, f"mismatch vs f32 reference: {err_f32}"

    print("KERNEL_OK")
</pallas_src>

<mosaic_0001>
module attributes {stable_mosaic.version = 11 : i64} {
  func.func @_conv_bn_relu_kernel(%arg0: i32, %arg1: memref<32x256xbf16, #tpu.memory_space<vmem>>, %arg2: memref<256x32xbf16, #tpu.memory_space<vmem>>, %arg3: memref<32x1xf32, #tpu.memory_space<vmem>>, %arg4: memref<32x1xf32, #tpu.memory_space<vmem>>, %arg5: memref<32x32xf32, #tpu.memory_space<vmem>>) attributes {dimension_semantics = [#tpu.dimension_semantics<arbitrary>], iteration_bounds = array<i64: 1>, scalar_prefetch = 0 : i64, scratch_operands = 0 : i64, tpu.core_type = #tpu.core_type<tc>, window_params = [{pipeline_mode = #tpu.pipeline_mode<synchronous>, transform_indices = @transform_0, window_bounds = array<i64: 32, 256>}, {pipeline_mode = #tpu.pipeline_mode<synchronous>, transform_indices = @transform_1, window_bounds = array<i64: 256, 32>}, {pipeline_mode = #tpu.pipeline_mode<synchronous>, transform_indices = @transform_2, window_bounds = array<i64: 32, 1>}, {pipeline_mode = #tpu.pipeline_mode<synchronous>, transform_indices = @transform_3, window_bounds = array<i64: 32, 1>}, {pipeline_mode = #tpu.pipeline_mode<synchronous>, transform_indices = @transform_4, window_bounds = array<i64: 32, 32>}]} {
    %c0 = arith.constant 0 : index
    %c0_0 = arith.constant 0 : index
    %0 = vector.load %arg1[%c0, %c0_0] : memref<32x256xbf16, #tpu.memory_space<vmem>>, vector<32x256xbf16>
    %c0_1 = arith.constant 0 : index
    %c0_2 = arith.constant 0 : index
    %1 = vector.load %arg2[%c0_1, %c0_2] : memref<256x32xbf16, #tpu.memory_space<vmem>>, vector<256x32xbf16>
    %cst = arith.constant dense<0.000000e+00> : vector<32x32xf32>
    %2 = tpu.matmul %0, %1, %cst {dimension_numbers = #tpu.dot_dimension_numbers<[1], [0], [0], [1], [0, 0, 1, 1], [], []>} : vector<32x256xbf16>, vector<256x32xbf16>, vector<32x32xf32> -> vector<32x32xf32>
    %cst_3 = arith.constant dense<0.000000e+00> : vector<32xf32>
    %3 = vector.multi_reduction <add>, %2, %cst_3 [1] : vector<32x32xf32> to vector<32xf32>
    %4 = vector.shape_cast %3 : vector<32xf32> to vector<32x1xf32>
    %cst_4 = arith.constant 3.125000e-02 : f32
    %5 = vector.broadcast %cst_4 : f32 to vector<32x1xf32>
    %6 = arith.mulf %4, %5 : vector<32x1xf32>
    %7 = vector.broadcast %6 : vector<32x1xf32> to vector<32x32xf32>
    %8 = arith.subf %2, %7 : vector<32x32xf32>
    %9 = arith.mulf %8, %8 : vector<32x32xf32>
    %cst_5 = arith.constant dense<0.000000e+00> : vector<32xf32>
    %10 = vector.multi_reduction <add>, %9, %cst_5 [1] : vector<32x32xf32> to vector<32xf32>
    %11 = vector.shape_cast %10 : vector<32xf32> to vector<32x1xf32>
    %cst_6 = arith.constant 3.125000e-02 : f32
    %12 = vector.broadcast %cst_6 : f32 to vector<32x1xf32>
    %13 = arith.mulf %11, %12 : vector<32x1xf32>
    %cst_7 = arith.constant 9.99999974E-6 : f32
    %14 = vector.broadcast %cst_7 : f32 to vector<32x1xf32>
    %15 = arith.addf %13, %14 : vector<32x1xf32>
    %16 = math.rsqrt %15 : vector<32x1xf32>
    %c0_8 = arith.constant 0 : index
    %c0_9 = arith.constant 0 : index
    %17 = vector.load %arg3[%c0_8, %c0_9] : memref<32x1xf32, #tpu.memory_space<vmem>>, vector<32x1xf32>
    %18 = arith.mulf %16, %17 : vector<32x1xf32>
    %19 = vector.broadcast %18 : vector<32x1xf32> to vector<32x32xf32>
    %20 = arith.mulf %8, %19 : vector<32x32xf32>
    %c0_10 = arith.constant 0 : index
    %c0_11 = arith.constant 0 : index
    %21 = vector.load %arg4[%c0_10, %c0_11] : memref<32x1xf32, #tpu.memory_space<vmem>>, vector<32x1xf32>
    %22 = vector.broadcast %21 : vector<32x1xf32> to vector<32x32xf32>
    %23 = arith.addf %20, %22 : vector<32x32xf32>
    %cst_12 = arith.constant 0.000000e+00 : f32
    %24 = vector.broadcast %cst_12 : f32 to vector<32x32xf32>
    %25 = arith.maximumf %23, %24 : vector<32x32xf32>
    %c0_13 = arith.constant 0 : index
    %c0_14 = arith.constant 0 : index
    %26 = vector.load %arg5[%c0_13, %c0_14] : memref<32x32xf32, #tpu.memory_space<vmem>>, vector<32x32xf32>
    tpu.vector_store %arg5[%c0_13, %c0_14], %25 {strides = array<i32>} : memref<32x32xf32, #tpu.memory_space<vmem>>, vector<32x32xf32>,
    return
  }
  func.func @transform_0(%arg0: i32) -> (i32, i32) {
    %c0_i32 = arith.constant 0 : i32
    %c0_i32_0 = arith.constant 0 : i32
    %c0_i32_1 = arith.constant 0 : i32
    return %c0_i32, %c0_i32_0 : i32, i32
  }
  func.func @transform_1(%arg0: i32) -> (i32, i32) {
    %c0_i32 = arith.constant 0 : i32
    %c0_i32_0 = arith.constant 0 : i32
    %c0_i32_1 = arith.constant 0 : i32
    return %c0_i32, %c0_i32_0 : i32, i32
  }
  func.func @transform_2(%arg0: i32) -> (i32, i32) {
    %c0_i32 = arith.constant 0 : i32
    %c0_i32_0 = arith.constant 0 : i32
    %c0_i32_1 = arith.constant 0 : i32
    return %c0_i32, %c0_i32_0 : i32, i32
  }
  func.func @transform_3(%arg0: i32) -> (i32, i32) {
    %c0_i32 = arith.constant 0 : i32
    %c0_i32_0 = arith.constant 0 : i32
    %c0_i32_1 = arith.constant 0 : i32
    return %c0_i32, %c0_i32_0 : i32, i32
  }
  func.func @transform_4(%arg0: i32) -> (i32, i32) {
    %c0_i32 = arith.constant 0 : i32
    %c0_i32_0 = arith.constant 0 : i32
    %c0_i32_1 = arith.constant 0 : i32
    return %c0_i32, %c0_i32_0 : i32, i32
  }
}

module attributes {stable_mosaic.version = 11 : i64} {
  func.func @_conv_bn_relu_kernel(%arg0: i32, %arg1: memref<24x512xbf16, #tpu.memory_space<vmem>>, %arg2: memref<512x128xbf16, #tpu.memory_space<vmem>>, %arg3: memref<24x1xf32, #tpu.memory_space<vmem>>, %arg4: memref<24x1xf32, #tpu.memory_space<vmem>>, %arg5: memref<24x128xf32, #tpu.memory_space<vmem>>) attributes {dimension_semantics = [#tpu.dimension_semantics<arbitrary>], iteration_bounds = array<i64: 1>, scalar_prefetch = 0 : i64, scratch_operands = 0 : i64, tpu.core_type = #tpu.core_type<tc>, window_params = [{pipeline_mode = #tpu.pipeline_mode<synchronous>, transform_indices = @transform_0, window_bounds = array<i64: 24, 512>}, {pipeline_mode = #tpu.pipeline_mode<synchronous>, transform_indices = @transform_1, window_bounds = array<i64: 512, 128>}, {pipeline_mode = #tpu.pipeline_mode<synchronous>, transform_indices = @transform_2, window_bounds = array<i64: 24, 1>}, {pipeline_mode = #tpu.pipeline_mode<synchronous>, transform_indices = @transform_3, window_bounds = array<i64: 24, 1>}, {pipeline_mode = #tpu.pipeline_mode<synchronous>, transform_indices = @transform_4, window_bounds = array<i64: 24, 128>}]} {
    %c0 = arith.constant 0 : index
    %c0_0 = arith.constant 0 : index
    %0 = vector.load %arg1[%c0, %c0_0] : memref<24x512xbf16, #tpu.memory_space<vmem>>, vector<24x512xbf16>
    %c0_1 = arith.constant 0 : index
    %c0_2 = arith.constant 0 : index
    %1 = vector.load %arg2[%c0_1, %c0_2] : memref<512x128xbf16, #tpu.memory_space<vmem>>, vector<512x128xbf16>
    %cst = arith.constant dense<0.000000e+00> : vector<24x128xf32>
    %2 = tpu.matmul %0, %1, %cst {dimension_numbers = #tpu.dot_dimension_numbers<[1], [0], [0], [1], [0, 0, 1, 1], [], []>} : vector<24x512xbf16>, vector<512x128xbf16>, vector<24x128xf32> -> vector<24x128xf32>
    %cst_3 = arith.constant dense<0.000000e+00> : vector<24xf32>
    %3 = vector.multi_reduction <add>, %2, %cst_3 [1] : vector<24x128xf32> to vector<24xf32>
    %4 = vector.shape_cast %3 : vector<24xf32> to vector<24x1xf32>
    %cst_4 = arith.constant 7.812500e-03 : f32
    %5 = vector.broadcast %cst_4 : f32 to vector<24x1xf32>
    %6 = arith.mulf %4, %5 : vector<24x1xf32>
    %7 = vector.broadcast %6 : vector<24x1xf32> to vector<24x128xf32>
    %8 = arith.subf %2, %7 : vector<24x128xf32>
    %9 = arith.mulf %8, %8 : vector<24x128xf32>
    %cst_5 = arith.constant dense<0.000000e+00> : vector<24xf32>
    %10 = vector.multi_reduction <add>, %9, %cst_5 [1] : vector<24x128xf32> to vector<24xf32>
    %11 = vector.shape_cast %10 : vector<24xf32> to vector<24x1xf32>
    %cst_6 = arith.constant 7.812500e-03 : f32
    %12 = vector.broadcast %cst_6 : f32 to vector<24x1xf32>
    %13 = arith.mulf %11, %12 : vector<24x1xf32>
    %cst_7 = arith.constant 9.99999974E-6 : f32
    %14 = vector.broadcast %cst_7 : f32 to vector<24x1xf32>
    %15 = arith.addf %13, %14 : vector<24x1xf32>
    %16 = math.rsqrt %15 : vector<24x1xf32>
    %c0_8 = arith.constant 0 : index
    %c0_9 = arith.constant 0 : index
    %17 = vector.load %arg3[%c0_8, %c0_9] : memref<24x1xf32, #tpu.memory_space<vmem>>, vector<24x1xf32>
    %18 = arith.mulf %16, %17 : vector<24x1xf32>
    %19 = vector.broadcast %18 : vector<24x1xf32> to vector<24x128xf32>
    %20 = arith.mulf %8, %19 : vector<24x128xf32>
    %c0_10 = arith.constant 0 : index
    %c0_11 = arith.constant 0 : index
    %21 = vector.load %arg4[%c0_10, %c0_11] : memref<24x1xf32, #tpu.memory_space<vmem>>, vector<24x1xf32>
    %22 = vector.broadcast %21 : vector<24x1xf32> to vector<24x128xf32>
    %23 = arith.addf %20, %22 : vector<24x128xf32>
    %cst_12 = arith.constant 0.000000e+00 : f32
    %24 = vector.broadcast %cst_12 : f32 to vector<24x128xf32>
    %25 = arith.maximumf %23, %24 : vector<24x128xf32>
    %c0_13 = arith.constant 0 : index
    %c0_14 = arith.constant 0 : index
    %26 = vector.load %arg5[%c0_13, %c0_14] : memref<24x128xf32, #tpu.memory_space<vmem>>, vector<24x128xf32>
    tpu.vector_store %arg5[%c0_13, %c0_14], %25 {strides = array<i32>} : memref<24x128xf32, #tpu.memory_space<vmem>>, vector<24x128xf32>,
    return
  }
  func.func @transform_0(%arg0: i32) -> (i32, i32) {
    %c0_i32 = arith.constant 0 : i32
    %c0_i32_0 = arith.constant 0 : i32
    %c0_i32_1 = arith.constant 0 : i32
    return %c0_i32, %c0_i32_0 : i32, i32
  }
  func.func @transform_1(%arg0: i32) -> (i32, i32) {
    %c0_i32 = arith.constant 0 : i32
    %c0_i32_0 = arith.constant 0 : i32
    %c0_i32_1 = arith.constant 0 : i32
    return %c0_i32, %c0_i32_0 : i32, i32
  }
  func.func @transform_2(%arg0: i32) -> (i32, i32) {
    %c0_i32 = arith.constant 0 : i32
    %c0_i32_0 = arith.constant 0 : i32
    %c0_i32_1 = arith.constant 0 : i32
    return %c0_i32, %c0_i32_0 : i32, i32
  }
  func.func @transform_3(%arg0: i32) -> (i32, i32) {
    %c0_i32 = arith.constant 0 : i32
    %c0_i32_0 = arith.constant 0 : i32
    %c0_i32_1 = arith.constant 0 : i32
    return %c0_i32, %c0_i32_0 : i32, i32
  }
  func.func @transform_4(%arg0: i32) -> (i32, i32) {
    %c0_i32 = arith.constant 0 : i32
    %c0_i32_0 = arith.constant 0 : i32
    %c0_i32_1 = arith.constant 0 : i32
    return %c0_i32, %c0_i32_0 : i32, i32
  }
}

module attributes {stable_mosaic.version = 11 : i64} {
  func.func @_conv_bn_relu_kernel(%arg0: i32, %arg1: memref<8x384xbf16, #tpu.memory_space<vmem>>, %arg2: memref<384x512xbf16, #tpu.memory_space<vmem>>, %arg3: memref<8x1xf32, #tpu.memory_space<vmem>>, %arg4: memref<8x1xf32, #tpu.memory_space<vmem>>, %arg5: memref<8x512xf32, #tpu.memory_space<vmem>>) attributes {dimension_semantics = [#tpu.dimension_semantics<arbitrary>], iteration_bounds = array<i64: 1>, scalar_prefetch = 0 : i64, scratch_operands = 0 : i64, tpu.core_type = #tpu.core_type<tc>, window_params = [{pipeline_mode = #tpu.pipeline_mode<synchronous>, transform_indices = @transform_0, window_bounds = array<i64: 8, 384>}, {pipeline_mode = #tpu.pipeline_mode<synchronous>, transform_indices = @transform_1, window_bounds = array<i64: 384, 512>}, {pipeline_mode = #tpu.pipeline_mode<synchronous>, transform_indices = @transform_2, window_bounds = array<i64: 8, 1>}, {pipeline_mode = #tpu.pipeline_mode<synchronous>, transform_indices = @transform_3, window_bounds = array<i64: 8, 1>}, {pipeline_mode = #tpu.pipeline_mode<synchronous>, transform_indices = @transform_4, window_bounds = array<i64: 8, 512>}]} {
    %c0 = arith.constant 0 : index
    %c0_0 = arith.constant 0 : index
    %0 = vector.load %arg1[%c0, %c0_0] : memref<8x384xbf16, #tpu.memory_space<vmem>>, vector<8x384xbf16>
    %c0_1 = arith.constant 0 : index
    %c0_2 = arith.constant 0 : index
    %1 = vector.load %arg2[%c0_1, %c0_2] : memref<384x512xbf16, #tpu.memory_space<vmem>>, vector<384x512xbf16>
    %cst = arith.constant dense<0.000000e+00> : vector<8x512xf32>
    %2 = tpu.matmul %0, %1, %cst {dimension_numbers = #tpu.dot_dimension_numbers<[1], [0], [0], [1], [0, 0, 1, 1], [], []>} : vector<8x384xbf16>, vector<384x512xbf16>, vector<8x512xf32> -> vector<8x512xf32>
    %cst_3 = arith.constant dense<0.000000e+00> : vector<8xf32>
    %3 = vector.multi_reduction <add>, %2, %cst_3 [1] : vector<8x512xf32> to vector<8xf32>
    %4 = vector.shape_cast %3 : vector<8xf32> to vector<8x1xf32>
    %cst_4 = arith.constant 0.001953125 : f32
    %5 = vector.broadcast %cst_4 : f32 to vector<8x1xf32>
    %6 = arith.mulf %4, %5 : vector<8x1xf32>
    %7 = vector.broadcast %6 : vector<8x1xf32> to vector<8x512xf32>
    %8 = arith.subf %2, %7 : vector<8x512xf32>
    %9 = arith.mulf %8, %8 : vector<8x512xf32>
    %cst_5 = arith.constant dense<0.000000e+00> : vector<8xf32>
    %10 = vector.multi_reduction <add>, %9, %cst_5 [1] : vector<8x512xf32> to vector<8xf32>
    %11 = vector.shape_cast %10 : vector<8xf32> to vector<8x1xf32>
    %cst_6 = arith.constant 0.001953125 : f32
    %12 = vector.broadcast %cst_6 : f32 to vector<8x1xf32>
    %13 = arith.mulf %11, %12 : vector<8x1xf32>
    %cst_7 = arith.constant 9.99999974E-6 : f32
    %14 = vector.broadcast %cst_7 : f32 to vector<8x1xf32>
    %15 = arith.addf %13, %14 : vector<8x1xf32>
    %16 = math.rsqrt %15 : vector<8x1xf32>
    %c0_8 = arith.constant 0 : index
    %c0_9 = arith.constant 0 : index
    %17 = vector.load %arg3[%c0_8, %c0_9] : memref<8x1xf32, #tpu.memory_space<vmem>>, vector<8x1xf32>
    %18 = arith.mulf %16, %17 : vector<8x1xf32>
    %19 = vector.broadcast %18 : vector<8x1xf32> to vector<8x512xf32>
    %20 = arith.mulf %8, %19 : vector<8x512xf32>
    %c0_10 = arith.constant 0 : index
    %c0_11 = arith.constant 0 : index
    %21 = vector.load %arg4[%c0_10, %c0_11] : memref<8x1xf32, #tpu.memory_space<vmem>>, vector<8x1xf32>
    %22 = vector.broadcast %21 : vector<8x1xf32> to vector<8x512xf32>
    %23 = arith.addf %20, %22 : vector<8x512xf32>
    %cst_12 = arith.constant 0.000000e+00 : f32
    %24 = vector.broadcast %cst_12 : f32 to vector<8x512xf32>
    %25 = arith.maximumf %23, %24 : vector<8x512xf32>
    %c0_13 = arith.constant 0 : index
    %c0_14 = arith.constant 0 : index
    %26 = vector.load %arg5[%c0_13, %c0_14] : memref<8x512xf32, #tpu.memory_space<vmem>>, vector<8x512xf32>
    tpu.vector_store %arg5[%c0_13, %c0_14], %25 {strides = array<i32>} : memref<8x512xf32, #tpu.memory_space<vmem>>, vector<8x512xf32>,
    return
  }
  func.func @transform_0(%arg0: i32) -> (i32, i32) {
    %c0_i32 = arith.constant 0 : i32
    %c0_i32_0 = arith.constant 0 : i32
    %c0_i32_1 = arith.constant 0 : i32
    return %c0_i32, %c0_i32_0 : i32, i32
  }
  func.func @transform_1(%arg0: i32) -> (i32, i32) {
    %c0_i32 = arith.constant 0 : i32
    %c0_i32_0 = arith.constant 0 : i32
    %c0_i32_1 = arith.constant 0 : i32
    return %c0_i32, %c0_i32_0 : i32, i32
  }
  func.func @transform_2(%arg0: i32) -> (i32, i32) {
    %c0_i32 = arith.constant 0 : i32
    %c0_i32_0 = arith.constant 0 : i32
    %c0_i32_1 = arith.constant 0 : i32
    return %c0_i32, %c0_i32_0 : i32, i32
  }
  func.func @transform_3(%arg0: i32) -> (i32, i32) {
    %c0_i32 = arith.constant 0 : i32
    %c0_i32_0 = arith.constant 0 : i32
    %c0_i32_1 = arith.constant 0 : i32
    return %c0_i32, %c0_i32_0 : i32, i32
  }
  func.func @transform_4(%arg0: i32) -> (i32, i32) {
    %c0_i32 = arith.constant 0 : i32
    %c0_i32_0 = arith.constant 0 : i32
    %c0_i32_1 = arith.constant 0 : i32
    return %c0_i32, %c0_i32_0 : i32, i32
  }
}

module attributes {stable_mosaic.version = 11 : i64} {
  func.func @_final_conv_add_tanh_kernel(%arg0: i32, %arg1: memref<3x128xbf16, #tpu.memory_space<vmem>>, %arg2: memref<128x2048xbf16, #tpu.memory_space<vmem>>, %arg3: memref<3x1xf32, #tpu.memory_space<vmem>>, %arg4: memref<1x2048xf32, #tpu.memory_space<vmem>>, %arg5: memref<3x2048xf32, #tpu.memory_space<vmem>>) attributes {dimension_semantics = [#tpu.dimension_semantics<arbitrary>], iteration_bounds = array<i64: 1>, scalar_prefetch = 0 : i64, scratch_operands = 0 : i64, tpu.core_type = #tpu.core_type<tc>, window_params = [{pipeline_mode = #tpu.pipeline_mode<synchronous>, transform_indices = @transform_0, window_bounds = array<i64: 3, 128>}, {pipeline_mode = #tpu.pipeline_mode<synchronous>, transform_indices = @transform_1, window_bounds = array<i64: 128, 2048>}, {pipeline_mode = #tpu.pipeline_mode<synchronous>, transform_indices = @transform_2, window_bounds = array<i64: 3, 1>}, {pipeline_mode = #tpu.pipeline_mode<synchronous>, transform_indices = @transform_3, window_bounds = array<i64: 1, 2048>}, {pipeline_mode = #tpu.pipeline_mode<synchronous>, transform_indices = @transform_4, window_bounds = array<i64: 3, 2048>}]} {
    %c0 = arith.constant 0 : index
    %c0_0 = arith.constant 0 : index
    %0 = vector.load %arg1[%c0, %c0_0] : memref<3x128xbf16, #tpu.memory_space<vmem>>, vector<3x128xbf16>
    %c0_1 = arith.constant 0 : index
    %c0_2 = arith.constant 0 : index
    %1 = vector.load %arg2[%c0_1, %c0_2] : memref<128x2048xbf16, #tpu.memory_space<vmem>>, vector<128x2048xbf16>
    %cst = arith.constant dense<0.000000e+00> : vector<3x2048xf32>
    %2 = tpu.matmul %0, %1, %cst {dimension_numbers = #tpu.dot_dimension_numbers<[1], [0], [0], [1], [0, 0, 1, 1], [], []>} : vector<3x128xbf16>, vector<128x2048xbf16>, vector<3x2048xf32> -> vector<3x2048xf32>
    %c0_3 = arith.constant 0 : index
    %c0_4 = arith.constant 0 : index
    %3 = vector.load %arg3[%c0_3, %c0_4] : memref<3x1xf32, #tpu.memory_space<vmem>>, vector<3x1xf32>
    %4 = vector.broadcast %3 : vector<3x1xf32> to vector<3x2048xf32>
    %5 = arith.addf %2, %4 : vector<3x2048xf32>
    %6 = tpu.iota {dimensions = array<i32: 0>} : vector<3x2048xi32>
    %c0_i32 = arith.constant 0 : i32
    %7 = vector.broadcast %c0_i32 : i32 to vector<3x2048xi32>
    %8 = arith.cmpi eq, %6, %7 : vector<3x2048xi32>
    %c0_5 = arith.constant 0 : index
    %c0_6 = arith.constant 0 : index
    %9 = vector.load %arg4[%c0_5, %c0_6] : memref<1x2048xf32, #tpu.memory_space<vmem>>, vector<1x2048xf32>
    %cst_7 = arith.constant 0.000000e+00 : f32
    %10 = vector.shape_cast %9 : vector<1x2048xf32> to vector<1x2048xf32>
    %11 = vector.broadcast %10 : vector<1x2048xf32> to vector<3x2048xf32>
    %12 = vector.broadcast %cst_7 : f32 to vector<3x2048xf32>
    %13 = arith.select %8, %11, %12 : vector<3x2048xi1>, vector<3x2048xf32>
    %14 = arith.addf %5, %13 : vector<3x2048xf32>
    %15 = math.tanh %14 : vector<3x2048xf32>
    %c0_8 = arith.constant 0 : index
    %c0_9 = arith.constant 0 : index
    %16 = vector.load %arg5[%c0_8, %c0_9] : memref<3x2048xf32, #tpu.memory_space<vmem>>, vector<3x2048xf32>
    tpu.vector_store %arg5[%c0_8, %c0_9], %15 {strides = array<i32>} : memref<3x2048xf32, #tpu.memory_space<vmem>>, vector<3x2048xf32>,
    return
  }
  func.func @transform_0(%arg0: i32) -> (i32, i32) {
    %c0_i32 = arith.constant 0 : i32
    %c0_i32_0 = arith.constant 0 : i32
    %c0_i32_1 = arith.constant 0 : i32
    return %c0_i32, %c0_i32_0 : i32, i32
  }
  func.func @transform_1(%arg0: i32) -> (i32, i32) {
    %c0_i32 = arith.constant 0 : i32
    %c0_i32_0 = arith.constant 0 : i32
    %c0_i32_1 = arith.constant 0 : i32
    return %c0_i32, %c0_i32_0 : i32, i32
  }
  func.func @transform_2(%arg0: i32) -> (i32, i32) {
    %c0_i32 = arith.constant 0 : i32
    %c0_i32_0 = arith.constant 0 : i32
    %c0_i32_1 = arith.constant 0 : i32
    return %c0_i32, %c0_i32_0 : i32, i32
  }
  func.func @transform_3(%arg0: i32) -> (i32, i32) {
    %c0_i32 = arith.constant 0 : i32
    %c0_i32_0 = arith.constant 0 : i32
    %c0_i32_1 = arith.constant 0 : i32
    return %c0_i32, %c0_i32_0 : i32, i32
  }
  func.func @transform_4(%arg0: i32) -> (i32, i32) {
    %c0_i32 = arith.constant 0 : i32
    %c0_i32_0 = arith.constant 0 : i32
    %c0_i32_1 = arith.constant 0 : i32
    return %c0_i32, %c0_i32_0 : i32, i32
  }
}

</mosaic_0001>

<bundles_post_ra>
// kernel: forward.4
= control target key start
LH: loop header
LB: loop body
LE: loop exit
PB: predicated region body
PF: predicated region fallthrough
CT: control target
= control target key end

     0   :  { %vm219_vm0 = vcmask 261120   ;;  %v437_v56 = vmov 0   ;;  %s591_s1 = inlined_call_operand.vmem [shape: bf16[256,32], index: 1, kind: input, shape index: {}]   ;;  %s592_s0 = inlined_call_operand.vmem [shape: bf16[32,256], index: 0, kind: input, shape index: {}]   ;;  %s593_s3 = inlined_call_operand.vmem [shape: f32[32,1], index: 3, kind: input, shape index: {}]   ;;  %s594_s2 = inlined_call_operand.vmem [shape: f32[32,1], index: 2, kind: input, shape index: {}]   ;;  %s595_s4 = inlined_call_operand.vmem [shape: f32[32,32], index: 4, kind: output, shape index: {}]  }
   0x1   :  { %v407_v0 = vld [vmem:[%s591_s1 + $0x40] sm:$0xff]   ;;  %v409_v2 = vld [vmem:[%s591_s1 + $0x48] sm:$0xff]   ;;  %v411_v4 = vld [vmem:[%s591_s1 + $0x50] sm:$0xff]   ;;  %406 = vset.pattern.permute.xlu1 %v437_v56  ;;  %405 = vset.pattern.permute.xlu0 %v437_v56 }
   0x2   :  { %v408_v1 = vld [vmem:[%s591_s1] sm:$0xff]   ;;  %360 = vmatprep.subr.bf16.mxu0 %v407_v0  ;;  %388 = vmatprep.subr.bf16.mxu1 %v407_v0  ;;  %v410_v3 = vld [vmem:[%s591_s1 + $0x8] sm:$0xff]   ;;  %v412_v5 = vld [vmem:[%s591_s1 + $0x10] sm:$0xff]  }
   0x3   :  { %361 = vmatpush3.bf16.msra.mxu0 %v408_v1  ;;  %396 = vmatpush3.bf16.msra.mxu1 %v408_v1  ;;  %v413_v6 = vld [vmem:[%s591_s1 + $0x58] sm:$0xff]   ;;  %v415_v8 = vld [vmem:[%s591_s1 + $0x60] sm:$0xff]   ;;  %v417_v10 = vld [vmem:[%s591_s1 + $0x68] sm:$0xff]  }
   0x4   :  { %362 = vmatprep.subr.bf16.mxu0 %v409_v2  ;;  %389 = vmatprep.subr.bf16.mxu1 %v409_v2  ;;  %v414_v7 = vld [vmem:[%s591_s1 + $0x18] sm:$0xff]   ;;  %v416_v9 = vld [vmem:[%s591_s1 + $0x20] sm:$0xff]   ;;  %v418_v13 = vld [vmem:[%s591_s1 + $0x28] sm:$0xff]  }
   0x5   :  { %v425_v11 = vld [vmem:[%s592_s0 + $0x4] ss:$8 sps:$4 sm:$0xff]   ;;  %v428_v12 = vld [vmem:[%s592_s0 + $0x14] ss:$8 sps:$4 sm:$0xff]   ;;  %v423_v18 = vld [vmem:[%s592_s0] ss:$8 sps:$4 sm:$0xff]  }
   0x6   :  { %v419_v14 = vld [vmem:[%s591_s1 + $0x70] sm:$0xff]   ;;  %202 = vmatprep.mubr.bf16.mxu0 %v425_v11  ;;  %210 = vmatprep.mubr.bf16.mxu1 %v428_v12  ;;  %v421_v16 = vld [vmem:[%s591_s1 + $0x78] sm:$0xff]   ;;  %v300_v57 = vld [vmem:[%s593_s3] sm:$0xff] }
   0x7   :  { %363 = vmatpush3.bf16.msra.mxu0 %v410_v3  ;;  %397 = vmatpush3.bf16.msra.mxu1 %v410_v3  ;;  %v420_v15 = vld [vmem:[%s591_s1 + $0x30] sm:$0xff]   ;;  %v422_v17 = vld [vmem:[%s591_s1 + $0x38] sm:$0xff]   ;;  %v301_v58 = vld [vmem:[%s593_s3 + $0x8] sm:$0xff] }
   0x8   :  { %364 = vmatprep.subr.bf16.mxu0 %v411_v4  ;;  %390 = vmatprep.subr.bf16.mxu1 %v411_v4  ;;  %v426_v19 = vld [vmem:[%s592_s0 + $0x10] ss:$8 sps:$4 sm:$0xff]  }
   0x9   :  { %v302_v59 = vld [vmem:[%s593_s3 + $0x10] sm:$0xff] }
   0xa   :  { %v270_v11 = vld [vmem:[%s594_s2 + $0x10] sm:$0xff] }
   0xb   :  { %365 = vmatpush3.bf16.msra.mxu0 %v412_v5  ;;  %398 = vmatpush3.bf16.msra.mxu1 %v412_v5 }
   0xc   :  { %366 = vmatprep.subr.bf16.mxu0 %v413_v6  ;;  %391 = vmatprep.subr.bf16.mxu1 %v413_v6 }
   0xf   :  { %367 = vmatpush3.bf16.msra.mxu0 %v414_v7  ;;  %399 = vmatpush3.bf16.msra.mxu1 %v414_v7 }
  0x10   :  { %368 = vmatprep.subr.bf16.mxu0 %v415_v8  ;;  %392 = vmatprep.subr.bf16.mxu1 %v415_v8  ;;  %v268_v8 = vld [vmem:[%s594_s2] sm:$0xff] }
  0x13   :  { %369 = vmatpush3.bf16.msra.mxu0 %v416_v9  ;;  %400 = vmatpush3.bf16.msra.mxu1 %v416_v9 }
  0x14   :  { %370 = vmatprep.subr.bf16.mxu0 %v417_v10  ;;  %393 = vmatprep.subr.bf16.mxu1 %v417_v10 }
  0x17   :  { %371 = vmatpush3.bf16.msra.mxu0 %v418_v13  ;;  %401 = vmatpush3.bf16.msra.mxu1 %v418_v13 }
  0x18   :  { %372 = vmatprep.subr.bf16.mxu0 %v419_v14  ;;  %394 = vmatprep.subr.bf16.mxu1 %v419_v14 }
  0x1b   :  { %373 = vmatpush3.bf16.msra.mxu0 %v420_v15  ;;  %402 = vmatpush3.bf16.msra.mxu1 %v420_v15  ;;  %v269_v15 = vld [vmem:[%s594_s2 + $0x8] sm:$0xff] }
  0x1c   :  { %374 = vmatprep.subr.bf16.mxu0 %v421_v16  ;;  %395 = vmatprep.subr.bf16.mxu1 %v421_v16 }
  0x1f   :  { %375 = vmatpush3.bf16.msra.mxu0 %v422_v17  ;;  %403 = vmatpush3.bf16.msra.mxu1 %v422_v17 }
  0x22   :  { %203 = vmatmul.mubr.bf16.vlgmr.msra.gmra.mrb[0].mxu0 %v423_v18  ;;  %211 = vmatmul.mubr.bf16.vlgmr.msra.gmra.mrb[0].mxu1 %v426_v19  ;;  %v271_v18 = vld [vmem:[%s594_s2 + $0x18] sm:$0xff] }
  0xf5   :  { %v376_v20 = vpop.f32.mrb[0].mxu0  ;;  %v382_v21 = vpop.f32.mrb[0].mxu1 }
  0xf6   :  { %v377_v22 = vpop.f32.mrb[1].mxu0  ;;  %v383_v23 = vpop.f32.mrb[1].mxu1 }
  0xf7   :  { %v378_v24 = vadd.f32 %v377_v22, %v376_v20  ;;  %v384_v25 = vadd.f32 %v383_v23, %v382_v21  ;;  %v379_v26 = vpop.f32.mrb[2].mxu0  ;;  %v385_v27 = vpop.f32.mrb[2].mxu1  ;;  %v303_v20 = vld [vmem:[%s593_s3 + $0x18] sm:$0xff] }
  0xf8   :  { %v380_v28 = vpop.f32.mrb[3].mxu0  ;;  %v386_v29 = vpop.f32.mrb[3].mxu1 }
  0xf9   :  { %v381_v30 = vadd.f32 %v380_v28, %v379_v26  ;;  %v387_v31 = vadd.f32 %v386_v29, %v385_v27  ;;  %v226_v32 = vsel %vm219_vm0, %v384_v25, 0.0  ;;  %v220_v33 = vsel %vm219_vm0, %v378_v24, 0.0 }
  0xfa   :  { %227 = vadd.xlane.f32.xlu1 %v226_v32  ;;  %221 = vadd.xlane.f32.xlu0 %v220_v33 }
  0xfb   :  { %v229_v34 = vsel %vm219_vm0, %v387_v31, 0.0  ;;  %v223_v35 = vsel %vm219_vm0, %v381_v30, 0.0 }
  0xfe   :  { %230 = vadd.xlane.f32.xlu1 %v229_v34  ;;  %224 = vadd.xlane.f32.xlu0 %v223_v35 }
 0x187   :  { %v228_v36 = vpop.xlane.xlu1 %227  ;;  %v222_v37 = vpop.xlane.xlu0 %221 }
 0x188   :  { %v234_v38 = vmul.f32 0.03125, %v228_v36  ;;  %v232_v39 = vmul.f32 0.03125, %v222_v37 }
 0x18a   :  { %v527_v40 = vsub.f32 %v384_v25, %v234_v38  ;;  %v529_v41 = vsub.f32 %v378_v24, %v232_v39 }
 0x18b   :  { %v231_v42 = vpop.xlane.xlu1 %230  ;;  %v225_v43 = vpop.xlane.xlu0 %224 }
 0x18c   :  { %v235_v44 = vmul.f32 0.03125, %v231_v42  ;;  %v233_v45 = vmul.f32 0.03125, %v225_v43  ;;  %v240_v46 = vmul.f32 %v529_v41, %v529_v41  ;;  %v242_v50 = vmul.f32 %v527_v40, %v527_v40 }
 0x18e   :  { %v533_v47 = vsub.f32 %v387_v31, %v235_v44  ;;  %v535_v48 = vsub.f32 %v381_v30, %v233_v45  ;;  %v244_v49 = vsel %vm219_vm0, %v240_v46, 0.0  ;;  %v250_v52 = vsel %vm219_vm0, %v242_v50, 0.0 }
 0x18f   :  { %245 = vadd.xlane.f32.xlu0 %v244_v49 }
 0x190   :  { %v241_v51 = vmul.f32 %v535_v48, %v535_v48  ;;  %v243_v54 = vmul.f32 %v533_v47, %v533_v47 }
 0x192   :  { %v247_v53 = vsel %vm219_vm0, %v241_v51, 0.0  ;;  %v253_v55 = vsel %vm219_vm0, %v243_v54, 0.0 }
 0x193   :  { %251 = vadd.xlane.f32.xlu0 %v250_v52  ;;  %248 = vadd.xlane.f32.xlu1 %v247_v53 }
 0x197   :  { %254 = vadd.xlane.f32.xlu1 %v253_v55 }
 0x1a8   :  { %306 = vperm.xlu1 %406, %v300_v57  }
 0x1ac   :  { %311 = vperm.xlu1 %406, %v301_v58  }
 0x1b0   :  { %316 = vperm.xlu1 %406, %v302_v59  }
 0x21c   :  { %v246_v60 = vpop.xlane.xlu0 %245 }
 0x21d   :  { %v256_v61 = vmul.f32 0.03125, %v246_v60 }
 0x21f   :  { %v260_v62 = vadd.f32 1e-05, %v256_v61 }
 0x220   :  { %v249_v63 = vpop.xlane.xlu1 %248  ;;  %v252_v0 = vpop.xlane.xlu0 %251 }
 0x221   :  { %429 = vrsqrt.f32 %v260_v62  ;;  %v257_v1 = vmul.f32 0.03125, %v249_v63  ;;  %v258_v2 = vmul.f32 0.03125, %v252_v0 }
 0x223   :  { %v262_v3 = vadd.f32 1e-05, %v258_v2  ;;  %v261_v4 = vadd.f32 1e-05, %v257_v1 }
 0x224   :  { %v255_v5 = vpop.xlane.xlu1 %254 }
 0x225   :  { %v259_v6 = vmul.f32 0.03125, %v255_v5  ;;  %431 = vrsqrt.f32 %v262_v3 }
 0x226   :  { %433 = vrsqrt.f32 %v261_v4 }
 0x227   :  { %v263_v7 = vadd.f32 1e-05, %v259_v6 }
 0x228   :  { %v307_v21 = vpop.permute.xlu1 %306 }
 0x229   :  { %435 = vrsqrt.f32 %v263_v7 }
 0x22b   :  { %v430_v9 = vpop.eup %429 }
 0x22c   :  { %v272_v10 = vmul.f32 %v430_v9, %v268_v8  ;;  %v312_v22 = vpop.permute.xlu1 %311 }
 0x22e   :  { %278 = vperm.xlu0 %405, %v272_v10  }
 0x22f   :  { %v432_v12 = vpop.eup %431 }
 0x230   :  { %v274_v13 = vmul.f32 %v432_v12, %v270_v11  ;;  %v434_v14 = vpop.eup %433  ;;  %v317_v24 = vpop.permute.xlu1 %316 }
 0x231   :  { %v273_v16 = vmul.f32 %v434_v14, %v269_v15 }
 0x232   :  { %288 = vperm.xlu1 %406, %v274_v13  }
 0x233   :  { %v436_v17 = vpop.eup %435 }
 0x234   :  { %v275_v19 = vmul.f32 %v436_v17, %v271_v18 }
 0x236   :  { %283 = vperm.xlu1 %406, %v273_v16  }
 0x23a   :  { %293 = vperm.xlu1 %406, %v275_v19  }
 0x23e   :  { %321 = vperm.xlu1 %406, %v303_v20  }
 0x2ad   :  { %v279_v23 = vpop.permute.xlu0 %278 }
 0x2ae   :  { %v296_v25 = vmul.f32 %v279_v23, %v529_v41 }
 0x2b0   :  { %v324_v26 = vadd.f32 %v307_v21, %v296_v25 }
 0x2b1   :  { %v289_v28 = vpop.permute.xlu1 %288 }
 0x2b2   :  { %v328_v27 = vmax.f32 %v324_v26, 0.0  ;;  %v298_v29 = vmul.f32 %v289_v28, %v527_v40 }
 0x2b4   :  { %332 = vst.msk [vmem:[%s595_s4] sm:$0xff] %vm219_vm0, %v328_v27  ;;  %v326_v30 = vadd.f32 %v317_v24, %v298_v29 }
 0x2b5   :  { %v284_v31 = vpop.permute.xlu1 %283 }
 0x2b6   :  { %v330_v32 = vmax.f32 %v326_v30, 0.0  ;;  %v297_v33 = vmul.f32 %v284_v31, %v535_v48 }
 0x2b8   :  { %334 = vst.msk [vmem:[%s595_s4 + $0x10] sm:$0xff] %vm219_vm0, %v330_v32  ;;  %v325_v34 = vadd.f32 %v312_v22, %v297_v33 }
 0x2b9   :  { %v294_v35 = vpop.permute.xlu1 %293 }
 0x2ba   :  { %v329_v36 = vmax.f32 %v325_v34, 0.0  ;;  %v299_v37 = vmul.f32 %v294_v35, %v533_v47 }
 0x2bc   :  { %333 = vst.msk [vmem:[%s595_s4 + $0x8] sm:$0xff] %vm219_vm0, %v329_v36 }
 0x2bd   :  { %v322_v38 = vpop.permute.xlu1 %321 }
 0x2be   :  { %v327_v39 = vadd.f32 %v322_v38, %v299_v37 }
 0x2c0   :  { %v331_v40 = vmax.f32 %v327_v39, 0.0 }
 0x2c2   :  { %335 = vst.msk [vmem:[%s595_s4 + $0x18] sm:$0xff] %vm219_vm0, %v331_v40 }

// kernel: forward.5
= control target key start
LH: loop header
LB: loop body
LE: loop exit
PB: predicated region body
PF: predicated region fallthrough
CT: control target
= control target key end

     0   :  { %s809_s1 = inlined_call_operand.vmem [shape: bf16[512,128], index: 1, kind: input, shape index: {}]   ;;  %s810_s0 = inlined_call_operand.vmem [shape: bf16[24,512], index: 0, kind: input, shape index: {}]   ;;  %s811_s3 = inlined_call_operand.vmem [shape: f32[24,1], index: 3, kind: input, shape index: {}]   ;;  %s812_s2 = inlined_call_operand.vmem [shape: f32[24,1], index: 2, kind: input, shape index: {}]   ;;  %s813_s4 = inlined_call_operand.vmem [shape: f32[24,128], index: 4, kind: output, shape index: {}]  }
   0x1   :  { %v594_v0 = vld [vmem:[%s809_s1 + $0x40] sm:$0xff]   ;;  %v598_v4 = vld [vmem:[%s809_s1 + $0x48] sm:$0xff]   ;;  %v602_v8 = vld [vmem:[%s809_s1 + $0x50] sm:$0xff]  }
   0x2   :  { %v595_v1 = vld [vmem:[%s809_s1 + $0xc0] sm:$0xff]   ;;  %535 = vmatprep.subr.bf16.mxu0 %v594_v0  ;;  %v599_v5 = vld [vmem:[%s809_s1 + $0xc8] sm:$0xff]   ;;  %v603_v9 = vld [vmem:[%s809_s1 + $0xd0] sm:$0xff]  }
   0x3   :  { %v596_v2 = vld [vmem:[%s809_s1] sm:$0xff]   ;;  %563 = vmatprep.subr.bf16.mxu1 %v595_v1  ;;  %v600_v6 = vld [vmem:[%s809_s1 + $0x8] sm:$0xff]   ;;  %v604_v10 = vld [vmem:[%s809_s1 + $0x10] sm:$0xff]  }
   0x4   :  { %v597_v3 = vld [vmem:[%s809_s1 + $0x80] sm:$0xff]   ;;  %536 = vmatpush3.bf16.msra.mxu0 %v596_v2  ;;  %v601_v7 = vld [vmem:[%s809_s1 + $0x88] sm:$0xff]   ;;  %v605_v11 = vld [vmem:[%s809_s1 + $0x90] sm:$0xff]  }
   0x5   :  { %564 = vmatpush3.bf16.msra.mxu1 %v597_v3  ;;  %537 = vmatprep.subr.bf16.mxu0 %v598_v4  ;;  %v606_v12 = vld [vmem:[%s809_s1 + $0x58] sm:$0xff]   ;;  %v610_v16 = vld [vmem:[%s809_s1 + $0x60] sm:$0xff]   ;;  %v614_v20 = vld [vmem:[%s809_s1 + $0x68] sm:$0xff]  }
   0x6   :  { %565 = vmatprep.subr.bf16.mxu1 %v599_v5  ;;  %v607_v13 = vld [vmem:[%s809_s1 + $0xd8] sm:$0xff]   ;;  %v611_v17 = vld [vmem:[%s809_s1 + $0xe0] sm:$0xff]   ;;  %v615_v21 = vld [vmem:[%s809_s1 + $0xe8] sm:$0xff]  }
   0x7   :  { %v608_v14 = vld [vmem:[%s809_s1 + $0x18] sm:$0xff]   ;;  %v612_v18 = vld [vmem:[%s809_s1 + $0x20] sm:$0xff]   ;;  %v616_v22 = vld [vmem:[%s809_s1 + $0x28] sm:$0xff]  }
   0x8   :  { %538 = vmatpush3.bf16.msra.mxu0 %v600_v6  ;;  %v609_v15 = vld [vmem:[%s809_s1 + $0x98] sm:$0xff]   ;;  %v613_v19 = vld [vmem:[%s809_s1 + $0xa0] sm:$0xff]   ;;  %v617_v23 = vld [vmem:[%s809_s1 + $0xa8] sm:$0xff]  }
   0x9   :  { %566 = vmatpush3.bf16.msra.mxu1 %v601_v7  ;;  %539 = vmatprep.subr.bf16.mxu0 %v602_v8  ;;  %v618_v24 = vld [vmem:[%s809_s1 + $0x70] sm:$0xff]   ;;  %v622_v28 = vld [vmem:[%s809_s1 + $0x78] sm:$0xff]   ;;  %v22_v36 = vld [vmem:[%s810_s0 + $0x20] sm:$0xff] }
   0xa   :  { %567 = vmatprep.subr.bf16.mxu1 %v603_v9  ;;  %v619_v25 = vld [vmem:[%s809_s1 + $0xf0] sm:$0xff]   ;;  %v623_v29 = vld [vmem:[%s809_s1 + $0xf8] sm:$0xff]   ;;  %v500_v37 = vcombine.high %v22_v36, %v22_v36  ;;  %v23_v38 = vld [vmem:[%s810_s0 + $0x28] sm:$0xff]  ;;  %v499_v40 = vcombine.low %v22_v36, %v22_v36 }
   0xb   :  { %v620_v26 = vld [vmem:[%s809_s1 + $0x30] sm:$0xff]   ;;  %v624_v30 = vld [vmem:[%s809_s1 + $0x38] sm:$0xff]   ;;  %v502_v39 = vcombine.high %v23_v38, %v23_v38  ;;  %v501_v41 = vcombine.low %v23_v38, %v23_v38 }
   0xc   :  { %540 = vmatpush3.bf16.msra.mxu0 %v604_v10  ;;  %v621_v27 = vld [vmem:[%s809_s1 + $0xb0] sm:$0xff]   ;;  %v625_v31 = vld [vmem:[%s809_s1 + $0xb8] sm:$0xff]  }
   0xd   :  { %568 = vmatpush3.bf16.msra.mxu1 %v605_v11  ;;  %541 = vmatprep.subr.bf16.mxu0 %v606_v12  ;;  %v626_v32 = vld [vmem:[%s810_s0] ss:$16 sps:$4 sm:$0xff]   ;;  %v628_v33 = vld [vmem:[%s810_s0 + $0x4] ss:$16 sps:$4 sm:$0xff]   ;;  %v629_v34 = vld [vmem:[%s810_s0 + $0x8] ss:$16 sps:$4 sm:$0xff]  }
   0xe   :  { %569 = vmatprep.subr.bf16.mxu1 %v607_v13  ;;  %v631_v35 = vld [vmem:[%s810_s0 + $0xc] ss:$16 sps:$4 sm:$0xff]   ;;  %346 = vmatprep.mubr.bf16.mxu0 %v628_v33  ;;  %v442_v33 = vld [vmem:[%s812_s2 + $0x10] sm:$0xff] }
   0xf   :  { %394 = vmatprep.mubr.bf16.mxu1 %v631_v35  ;;  %v466_v36 = vld [vmem:[%s811_s3 + $0x10] sm:$0xff] }
  0x10   :  { %542 = vmatpush3.bf16.msra.mxu0 %v608_v14 }
  0x11   :  { %570 = vmatpush3.bf16.msra.mxu1 %v609_v15  ;;  %543 = vmatprep.subr.bf16.mxu0 %v610_v16  ;;  %v642_v15 = vmov 0   ;;  %v464_v16 = vld [vmem:[%s811_s3] sm:$0xff] }
  0x12   :  { %571 = vmatprep.subr.bf16.mxu1 %v611_v17  ;;  %593 = vset.pattern.permute.xlu1 %v642_v15  ;;  %v465_v17 = vld [vmem:[%s811_s3 + $0x8] sm:$0xff] }
  0x13   :  { %592 = vset.pattern.permute.xlu0 %v642_v15 }
  0x14   :  { %544 = vmatpush3.bf16.msra.mxu0 %v612_v18 }
  0x15   :  { %572 = vmatpush3.bf16.msra.mxu1 %v613_v19  ;;  %545 = vmatprep.subr.bf16.mxu0 %v614_v20 }
  0x16   :  { %573 = vmatprep.subr.bf16.mxu1 %v615_v21 }
  0x18   :  { %546 = vmatpush3.bf16.msra.mxu0 %v616_v22 }
  0x19   :  { %574 = vmatpush3.bf16.msra.mxu1 %v617_v23  ;;  %547 = vmatprep.subr.bf16.mxu0 %v618_v24 }
  0x1a   :  { %575 = vmatprep.subr.bf16.mxu1 %v619_v25 }
  0x1c   :  { %548 = vmatpush3.bf16.msra.mxu0 %v620_v26 }
  0x1d   :  { %576 = vmatpush3.bf16.msra.mxu1 %v621_v27  ;;  %549 = vmatprep.subr.bf16.mxu0 %v622_v28  ;;  %v440_v27 = vld [vmem:[%s812_s2] sm:$0xff] }
  0x1e   :  { %577 = vmatprep.subr.bf16.mxu1 %v623_v29 }
  0x20   :  { %550 = vmatpush3.bf16.msra.mxu0 %v624_v30  ;;  %v441_v30 = vld [vmem:[%s812_s2 + $0x8] sm:$0xff] }
  0x21   :  { %578 = vmatpush3.bf16.msra.mxu1 %v625_v31 }
  0x23   :  { %347 = vmatmul.mubr.bf16.vlgmr.msra.gmra.mrb[0].mxu0 %v626_v32 }
  0x24   :  { %395 = vmatmul.mubr.bf16.vlgmr.msra.gmra.mrb[0].mxu1 %v629_v34  ;;  %354 = vmatprep.mubr.bf16.mxu0 %v500_v37 }
  0x25   :  { %402 = vmatprep.mubr.bf16.mxu1 %v502_v39 }
  0x2b   :  { %355 = vmatmul.mubr.bf16.gmra.mrb[4].mxu0 %v499_v40 }
  0x2c   :  { %403 = vmatmul.mubr.bf16.gmra.mrb[4].mxu1 %v501_v41 }
  0xf6   :  { %v551_v42 = vpop.f32.mrb[0].mxu0 }
  0xf7   :  { %v579_v43 = vpop.f32.mrb[0].mxu1  ;;  %v552_v44 = vpop.f32.mrb[1].mxu0 }
  0xf8   :  { %v553_v45 = vadd.f32 %v552_v44, %v551_v42  ;;  %v580_v46 = vpop.f32.mrb[1].mxu1  ;;  %v554_v47 = vpop.f32.mrb[2].mxu0 }
  0xf9   :  { %v581_v48 = vadd.f32 %v580_v46, %v579_v43  ;;  %v582_v49 = vpop.f32.mrb[2].mxu1  ;;  %v555_v50 = vpop.f32.mrb[3].mxu0 }
  0xfa   :  { %v556_v51 = vadd.f32 %v555_v50, %v554_v47  ;;  %v583_v52 = vpop.f32.mrb[3].mxu1 }
  0xfb   :  { %v584_v53 = vadd.f32 %v583_v52, %v582_v49  ;;  %v397_v54 = vadd.f32 %v581_v48, %v553_v45 }
  0xfd   :  { %410 = vadd.xlane.f32.xlu0 %v397_v54  ;;  %v400_v55 = vadd.f32 %v584_v53, %v556_v51 }
  0xfe   :  { %v557_v56 = vpop.f32.mrb[4].mxu0 }
  0xff   :  { %v585_v57 = vpop.f32.mrb[4].mxu1  ;;  %v558_v58 = vpop.f32.mrb[5].mxu0 }
 0x100   :  { %v559_v59 = vadd.f32 %v558_v58, %v557_v56  ;;  %v586_v60 = vpop.f32.mrb[5].mxu1  ;;  %v560_v61 = vpop.f32.mrb[6].mxu0 }
 0x101   :  { %v587_v62 = vadd.f32 %v586_v60, %v585_v57  ;;  %v588_v63 = vpop.f32.mrb[6].mxu1  ;;  %412 = vadd.xlane.f32.xlu0 %v400_v55  ;;  %v561_v0 = vpop.f32.mrb[7].mxu0 }
 0x102   :  { %v589_v1 = vpop.f32.mrb[7].mxu1 }
 0x103   :  { %v405_v2 = vadd.f32 %v587_v62, %v559_v59 }
 0x105   :  { %414 = vadd.xlane.f32.xlu1 %v405_v2 }
 0x18a   :  { %v411_v3 = vpop.xlane.xlu0 %410 }
 0x18b   :  { %v416_v4 = vmul.f32 0.0078125, %v411_v3 }
 0x18d   :  { %v419_v5 = vsub.f32 %v397_v54, %v416_v4 }
 0x18e   :  { %v413_v6 = vpop.xlane.xlu0 %412 }
 0x18f   :  { %v417_v7 = vmul.f32 0.0078125, %v413_v6  ;;  %v422_v8 = vmul.f32 %v419_v5, %v419_v5 }
 0x191   :  { %v420_v9 = vsub.f32 %v400_v55, %v417_v7  ;;  %425 = vadd.xlane.f32.xlu1 %v422_v8 }
 0x192   :  { %v415_v10 = vpop.xlane.xlu1 %414 }
 0x193   :  { %v418_v11 = vmul.f32 0.0078125, %v415_v10  ;;  %v423_v12 = vmul.f32 %v420_v9, %v420_v9 }
 0x195   :  { %v421_v13 = vsub.f32 %v405_v2, %v418_v11  ;;  %427 = vadd.xlane.f32.xlu0 %v423_v12 }
 0x197   :  { %v424_v14 = vmul.f32 %v421_v13, %v421_v13 }
 0x199   :  { %429 = vadd.xlane.f32.xlu1 %v424_v14 }
 0x1aa   :  { %469 = vperm.xlu1 %593, %v464_v16  }
 0x1ae   :  { %474 = vperm.xlu1 %593, %v465_v17  }
 0x21e   :  { %v426_v18 = vpop.xlane.xlu1 %425 }
 0x21f   :  { %v431_v19 = vmul.f32 0.0078125, %v426_v18 }
 0x221   :  { %v434_v20 = vadd.f32 1e-05, %v431_v19 }
 0x222   :  { %v428_v21 = vpop.xlane.xlu0 %427 }
 0x223   :  { %636 = vrsqrt.f32 %v434_v20  ;;  %v432_v22 = vmul.f32 0.0078125, %v428_v21 }
 0x225   :  { %v435_v23 = vadd.f32 1e-05, %v432_v22 }
 0x226   :  { %v430_v24 = vpop.xlane.xlu1 %429 }
 0x227   :  { %638 = vrsqrt.f32 %v435_v23  ;;  %v433_v25 = vmul.f32 0.0078125, %v430_v24 }
 0x229   :  { %v436_v26 = vadd.f32 1e-05, %v433_v25 }
 0x22a   :  { %v470_v37 = vpop.permute.xlu1 %469 }
 0x22b   :  { %640 = vrsqrt.f32 %v436_v26 }
 0x22d   :  { %v637_v28 = vpop.eup %636 }
 0x22e   :  { %v443_v29 = vmul.f32 %v637_v28, %v440_v27  ;;  %v475_v38 = vpop.permute.xlu1 %474 }
 0x230   :  { %448 = vperm.xlu0 %592, %v443_v29  }
 0x231   :  { %v639_v31 = vpop.eup %638 }
 0x232   :  { %v444_v32 = vmul.f32 %v639_v31, %v441_v30 }
 0x234   :  { %453 = vperm.xlu1 %593, %v444_v32  }
 0x235   :  { %v641_v34 = vpop.eup %640 }
 0x236   :  { %v445_v35 = vmul.f32 %v641_v34, %v442_v33 }
 0x238   :  { %458 = vperm.xlu1 %593, %v445_v35  }
 0x23c   :  { %479 = vperm.xlu1 %593, %v466_v36  }
 0x2af   :  { %v449_v39 = vpop.permute.xlu0 %448 }
 0x2b0   :  { %v461_v40 = vmul.f32 %v449_v39, %v419_v5 }
 0x2b2   :  { %v482_v41 = vadd.f32 %v470_v37, %v461_v40 }
 0x2b3   :  { %v454_v42 = vpop.permute.xlu1 %453 }
 0x2b4   :  { %v485_v43 = vmax.f32 %v482_v41, 0.0  ;;  %v462_v44 = vmul.f32 %v454_v42, %v420_v9 }
 0x2b6   :  { %488 = vst [vmem:[%s813_s4] sm:$0xff] %v485_v43  ;;  %v483_v45 = vadd.f32 %v475_v38, %v462_v44 }
 0x2b7   :  { %v459_v46 = vpop.permute.xlu1 %458 }
 0x2b8   :  { %v486_v47 = vmax.f32 %v483_v45, 0.0  ;;  %v463_v48 = vmul.f32 %v459_v46, %v421_v13 }
 0x2ba   :  { %489 = vst [vmem:[%s813_s4 + $0x8] sm:$0xff] %v486_v47 }
 0x2bb   :  { %v480_v49 = vpop.permute.xlu1 %479 }
 0x2bc   :  { %v484_v50 = vadd.f32 %v480_v49, %v463_v48 }
 0x2be   :  { %v487_v51 = vmax.f32 %v484_v50, 0.0 }
 0x2c0   :  { %490 = vst [vmem:[%s813_s4 + $0x10] sm:$0xff] %v487_v51 }

// kernel: forward.6
= control target key start
LH: loop header
LB: loop body
LE: loop exit
PB: predicated region body
PF: predicated region fallthrough
CT: control target
= control target key end

     0   :  { %v1085_v1 = vmov 0   ;;  %s1427_s1 = inlined_call_operand.vmem [shape: bf16[384,512], index: 1, kind: input, shape index: {}]   ;;  %s1428_s0 = inlined_call_operand.vmem [shape: bf16[8,384], index: 0, kind: input, shape index: {}]   ;;  %s1429_s2 = inlined_call_operand.vmem [shape: f32[8,1], index: 2, kind: input, shape index: {}]   ;;  %s1430_s3 = inlined_call_operand.vmem [shape: f32[8,1], index: 3, kind: input, shape index: {}]   ;;  %s1431_s4 = inlined_call_operand.vmem [shape: f32[8,512], index: 4, kind: output, shape index: {}]  }
   0x1   :  { %v936_v0 = vld [vmem:[%s1427_s1 + $0x4] ss:$16 sps:$4 sm:$0xff]   ;;  %934 = vset.pattern.permute.xlu1 %v1085_v1  ;;  %935 = vset.pattern.permute.xlu0 %v1085_v1  ;;  %v938_v2 = vld [vmem:[%s1427_s1 + $0xc] ss:$16 sps:$4 sm:$0xff]   ;;  %v940_v3 = vld [vmem:[%s1427_s1] ss:$16 sps:$4 sm:$0xff]  }
   0x2   :  { %607 = vmatprep.subr.bf16.mxu0 %v936_v0  ;;  %v941_v4 = vld [vmem:[%s1427_s1 + $0x8] ss:$16 sps:$4 sm:$0xff]   ;;  %689 = vmatprep.subr.bf16.mxu1 %v938_v2  ;;  %v942_v5 = vld [vmem:[%s1427_s1 + $0x24] ss:$16 sps:$4 sm:$0xff]   ;;  %v944_v6 = vld [vmem:[%s1427_s1 + $0x2c] ss:$16 sps:$4 sm:$0xff]  }
   0x3   :  { %608 = vmatpush1.bf16.msra.mxu0 %v940_v3  ;;  %690 = vmatpush1.bf16.msra.mxu1 %v941_v4  ;;  %v946_v7 = vld [vmem:[%s1427_s1 + $0x20] ss:$16 sps:$4 sm:$0xff]   ;;  %v947_v8 = vld [vmem:[%s1427_s1 + $0x28] ss:$16 sps:$4 sm:$0xff]   ;;  %v948_v9 = vld [vmem:[%s1427_s1 + $0x44] ss:$16 sps:$4 sm:$0xff]  }
   0x4   :  { %609 = vmatprep.subr.bf16.mxu0 %v942_v5  ;;  %691 = vmatprep.subr.bf16.mxu1 %v944_v6  ;;  %v950_v10 = vld [vmem:[%s1427_s1 + $0x4c] ss:$16 sps:$4 sm:$0xff]   ;;  %v952_v11 = vld [vmem:[%s1427_s1 + $0x40] ss:$16 sps:$4 sm:$0xff]   ;;  %v953_v12 = vld [vmem:[%s1427_s1 + $0x48] ss:$16 sps:$4 sm:$0xff]  }
   0x5   :  { %v954_v13 = vld [vmem:[%s1427_s1 + $0x64] ss:$16 sps:$4 sm:$0xff]   ;;  %v956_v14 = vld [vmem:[%s1427_s1 + $0x6c] ss:$16 sps:$4 sm:$0xff]   ;;  %v958_v15 = vld [vmem:[%s1427_s1 + $0x60] ss:$16 sps:$4 sm:$0xff]  }
   0x6   :  { %v959_v16 = vld [vmem:[%s1427_s1 + $0x68] ss:$16 sps:$4 sm:$0xff]   ;;  %v960_v17 = vld [vmem:[%s1427_s1 + $0x84] ss:$16 sps:$4 sm:$0xff]   ;;  %v962_v18 = vld [vmem:[%s1427_s1 + $0x8c] ss:$16 sps:$4 sm:$0xff]  }
   0x7   :  { %610 = vmatpush1.bf16.msra.mxu0 %v946_v7  ;;  %692 = vmatpush1.bf16.msra.mxu1 %v947_v8  ;;  %v964_v19 = vld [vmem:[%s1427_s1 + $0x80] ss:$16 sps:$4 sm:$0xff]   ;;  %v965_v20 = vld [vmem:[%s1427_s1 + $0x88] ss:$16 sps:$4 sm:$0xff]   ;;  %v966_v21 = vld [vmem:[%s1427_s1 + $0xa4] ss:$16 sps:$4 sm:$0xff]  }
   0x8   :  { %611 = vmatprep.subr.bf16.mxu0 %v948_v9  ;;  %693 = vmatprep.subr.bf16.mxu1 %v950_v10  ;;  %v968_v22 = vld [vmem:[%s1427_s1 + $0xac] ss:$16 sps:$4 sm:$0xff]   ;;  %v970_v23 = vld [vmem:[%s1427_s1 + $0xa0] ss:$16 sps:$4 sm:$0xff]   ;;  %v971_v24 = vld [vmem:[%s1427_s1 + $0xa8] ss:$16 sps:$4 sm:$0xff]  }
   0x9   :  { %v972_v25 = vld [vmem:[%s1427_s1 + $0xc4] ss:$16 sps:$4 sm:$0xff]   ;;  %v974_v26 = vld [vmem:[%s1427_s1 + $0xcc] ss:$16 sps:$4 sm:$0xff]   ;;  %v976_v27 = vld [vmem:[%s1427_s1 + $0xc0] ss:$16 sps:$4 sm:$0xff]  }
   0xa   :  { %v977_v28 = vld [vmem:[%s1427_s1 + $0xc8] ss:$16 sps:$4 sm:$0xff]   ;;  %v978_v29 = vld [vmem:[%s1427_s1 + $0xe4] ss:$16 sps:$4 sm:$0xff]   ;;  %v980_v30 = vld [vmem:[%s1427_s1 + $0xec] ss:$16 sps:$4 sm:$0xff]  }
   0xb   :  { %612 = vmatpush1.bf16.msra.mxu0 %v952_v11  ;;  %694 = vmatpush1.bf16.msra.mxu1 %v953_v12  ;;  %v982_v31 = vld [vmem:[%s1427_s1 + $0xe0] ss:$16 sps:$4 sm:$0xff]   ;;  %v983_v32 = vld [vmem:[%s1427_s1 + $0xe8] ss:$16 sps:$4 sm:$0xff]   ;;  %v984_v33 = vld [vmem:[%s1427_s1 + $0x104] ss:$16 sps:$4 sm:$0xff]  }
   0xc   :  { %613 = vmatprep.subr.bf16.mxu0 %v954_v13  ;;  %695 = vmatprep.subr.bf16.mxu1 %v956_v14  ;;  %v986_v34 = vld [vmem:[%s1427_s1 + $0x10c] ss:$16 sps:$4 sm:$0xff]   ;;  %v988_v35 = vld [vmem:[%s1427_s1 + $0x100] ss:$16 sps:$4 sm:$0xff]   ;;  %v989_v36 = vld [vmem:[%s1427_s1 + $0x108] ss:$16 sps:$4 sm:$0xff]  }
   0xd   :  { %v990_v37 = vld [vmem:[%s1427_s1 + $0x124] ss:$16 sps:$4 sm:$0xff]   ;;  %v992_v38 = vld [vmem:[%s1427_s1 + $0x12c] ss:$16 sps:$4 sm:$0xff]   ;;  %v994_v39 = vld [vmem:[%s1427_s1 + $0x120] ss:$16 sps:$4 sm:$0xff]  }
   0xe   :  { %v995_v40 = vld [vmem:[%s1427_s1 + $0x128] ss:$16 sps:$4 sm:$0xff]   ;;  %v996_v41 = vld [vmem:[%s1427_s1 + $0x144] ss:$16 sps:$4 sm:$0xff]   ;;  %v998_v42 = vld [vmem:[%s1427_s1 + $0x14c] ss:$16 sps:$4 sm:$0xff]  }
   0xf   :  { %614 = vmatpush1.bf16.msra.mxu0 %v958_v15  ;;  %696 = vmatpush1.bf16.msra.mxu1 %v959_v16  ;;  %v1000_v43 = vld [vmem:[%s1427_s1 + $0x140] ss:$16 sps:$4 sm:$0xff]   ;;  %v1001_v44 = vld [vmem:[%s1427_s1 + $0x148] ss:$16 sps:$4 sm:$0xff]   ;;  %v1002_v45 = vld [vmem:[%s1427_s1 + $0x164] ss:$16 sps:$4 sm:$0xff]  }
  0x10   :  { %615 = vmatprep.subr.bf16.mxu0 %v960_v17  ;;  %697 = vmatprep.subr.bf16.mxu1 %v962_v18  ;;  %v1004_v46 = vld [vmem:[%s1427_s1 + $0x16c] ss:$16 sps:$4 sm:$0xff]   ;;  %v18_v47 = vld [vmem:[%s1428_s0] sm:$0xff]  ;;  %v1007_v50 = vld [vmem:[%s1427_s1 + $0x168] ss:$16 sps:$4 sm:$0xff]  }
  0x11   :  { %v1006_v48 = vld [vmem:[%s1427_s1 + $0x160] ss:$16 sps:$4 sm:$0xff]   ;;  %v827_v49 = vcombine.high %v18_v47, %v18_v47  ;;  %v1008_v51 = vld [vmem:[%s1427_s1 + $0x184] ss:$16 sps:$4 sm:$0xff]   ;;  %v1010_v52 = vld [vmem:[%s1427_s1 + $0x18c] ss:$16 sps:$4 sm:$0xff]   ;;  %v826_v6 = vcombine.low %v18_v47, %v18_v47 }
  0x12   :  { %v1012_v53 = vld [vmem:[%s1427_s1 + $0x180] ss:$16 sps:$4 sm:$0xff]   ;;  %v1013_v54 = vld [vmem:[%s1427_s1 + $0x188] ss:$16 sps:$4 sm:$0xff]   ;;  %v1014_v55 = vld [vmem:[%s1427_s1 + $0x1a4] ss:$16 sps:$4 sm:$0xff]  }
  0x13   :  { %616 = vmatpush1.bf16.msra.mxu0 %v964_v19  ;;  %698 = vmatpush1.bf16.msra.mxu1 %v965_v20  ;;  %v1016_v56 = vld [vmem:[%s1427_s1 + $0x1ac] ss:$16 sps:$4 sm:$0xff]   ;;  %v1018_v57 = vld [vmem:[%s1427_s1 + $0x1a0] ss:$16 sps:$4 sm:$0xff]   ;;  %v1019_v58 = vld [vmem:[%s1427_s1 + $0x1a8] ss:$16 sps:$4 sm:$0xff]  }
  0x14   :  { %617 = vmatprep.subr.bf16.mxu0 %v966_v21  ;;  %699 = vmatprep.subr.bf16.mxu1 %v968_v22  ;;  %v1020_v59 = vld [vmem:[%s1427_s1 + $0x1c4] ss:$16 sps:$4 sm:$0xff]   ;;  %v1022_v60 = vld [vmem:[%s1427_s1 + $0x1cc] ss:$16 sps:$4 sm:$0xff]   ;;  %v1024_v61 = vld [vmem:[%s1427_s1 + $0x1c0] ss:$16 sps:$4 sm:$0xff]  }
  0x15   :  { %639 = vmatprep.mubr.bf16.mxu0 %v827_v49  ;;  %721 = vmatprep.mubr.bf16.mxu1 %v827_v49  ;;  %v1025_v62 = vld [vmem:[%s1427_s1 + $0x1c8] ss:$16 sps:$4 sm:$0xff]   ;;  %v1026_v63 = vld [vmem:[%s1427_s1 + $0x1e4] ss:$16 sps:$4 sm:$0xff]   ;;  %v1028_v0 = vld [vmem:[%s1427_s1 + $0x1ec] ss:$16 sps:$4 sm:$0xff]  }
  0x16   :  { %v1030_v2 = vld [vmem:[%s1427_s1 + $0x1e0] ss:$16 sps:$4 sm:$0xff]   ;;  %v1031_v3 = vld [vmem:[%s1427_s1 + $0x1e8] ss:$16 sps:$4 sm:$0xff]   ;;  %v1037_v4 = vld [vmem:[%s1427_s1 + $0x204] ss:$16 sps:$4 sm:$0xff]  }
  0x17   :  { %618 = vmatpush1.bf16.msra.mxu0 %v970_v23  ;;  %700 = vmatpush1.bf16.msra.mxu1 %v971_v24  ;;  %v1040_v5 = vld [vmem:[%s1427_s1 + $0x20c] ss:$16 sps:$4 sm:$0xff]   ;;  %v1035_v7 = vld [vmem:[%s1427_s1 + $0x200] ss:$16 sps:$4 sm:$0xff]   ;;  %v1038_v8 = vld [vmem:[%s1427_s1 + $0x208] ss:$16 sps:$4 sm:$0xff]  }
  0x18   :  { %619 = vmatprep.subr.bf16.mxu0 %v972_v25  ;;  %701 = vmatprep.subr.bf16.mxu1 %v974_v26  ;;  %v1043_v9 = vld [vmem:[%s1427_s1 + $0x224] ss:$16 sps:$4 sm:$0xff]   ;;  %v1046_v10 = vld [vmem:[%s1427_s1 + $0x22c] ss:$16 sps:$4 sm:$0xff]   ;;  %v1041_v11 = vld [vmem:[%s1427_s1 + $0x220] ss:$16 sps:$4 sm:$0xff]  }
  0x19   :  { %v1044_v12 = vld [vmem:[%s1427_s1 + $0x228] ss:$16 sps:$4 sm:$0xff]   ;;  %v1049_v13 = vld [vmem:[%s1427_s1 + $0x244] ss:$16 sps:$4 sm:$0xff]   ;;  %v1052_v14 = vld [vmem:[%s1427_s1 + $0x24c] ss:$16 sps:$4 sm:$0xff]  }
  0x1a   :  { %v1047_v15 = vld [vmem:[%s1427_s1 + $0x240] ss:$16 sps:$4 sm:$0xff]   ;;  %v1050_v16 = vld [vmem:[%s1427_s1 + $0x248] ss:$16 sps:$4 sm:$0xff]   ;;  %v1055_v17 = vld [vmem:[%s1427_s1 + $0x264] ss:$16 sps:$4 sm:$0xff]  }
  0x1b   :  { %620 = vmatpush1.bf16.msra.mxu0 %v976_v27  ;;  %702 = vmatpush1.bf16.msra.mxu1 %v977_v28  ;;  %v1053_v18 = vld [vmem:[%s1427_s1 + $0x260] ss:$16 sps:$4 sm:$0xff]   ;;  %v1056_v19 = vld [vmem:[%s1427_s1 + $0x268] ss:$16 sps:$4 sm:$0xff]   ;;  %v1061_v20 = vld [vmem:[%s1427_s1 + $0x284] ss:$16 sps:$4 sm:$0xff]  }
  0x1c   :  { %621 = vmatprep.subr.bf16.mxu0 %v978_v29  ;;  %703 = vmatprep.subr.bf16.mxu1 %v980_v30  ;;  %v1064_v21 = vld [vmem:[%s1427_s1 + $0x28c] ss:$16 sps:$4 sm:$0xff]   ;;  %v1059_v22 = vld [vmem:[%s1427_s1 + $0x280] ss:$16 sps:$4 sm:$0xff]   ;;  %v1062_v23 = vld [vmem:[%s1427_s1 + $0x288] ss:$16 sps:$4 sm:$0xff]  }
  0x1d   :  { %v1067_v24 = vld [vmem:[%s1427_s1 + $0x2a4] ss:$16 sps:$4 sm:$0xff]   ;;  %v1070_v25 = vld [vmem:[%s1427_s1 + $0x2ac] ss:$16 sps:$4 sm:$0xff]   ;;  %v1065_v26 = vld [vmem:[%s1427_s1 + $0x2a0] ss:$16 sps:$4 sm:$0xff]  }
  0x1e   :  { %v1068_v27 = vld [vmem:[%s1427_s1 + $0x2a8] ss:$16 sps:$4 sm:$0xff]   ;;  %v1073_v28 = vld [vmem:[%s1427_s1 + $0x2c4] ss:$16 sps:$4 sm:$0xff]   ;;  %v1076_v29 = vld [vmem:[%s1427_s1 + $0x2cc] ss:$16 sps:$4 sm:$0xff]  }
  0x1f   :  { %622 = vmatpush1.bf16.msra.mxu0 %v982_v31  ;;  %704 = vmatpush1.bf16.msra.mxu1 %v983_v32  ;;  %v1071_v30 = vld [vmem:[%s1427_s1 + $0x2c0] ss:$16 sps:$4 sm:$0xff]   ;;  %v1074_v31 = vld [vmem:[%s1427_s1 + $0x2c8] ss:$16 sps:$4 sm:$0xff]   ;;  %v1079_v32 = vld [vmem:[%s1427_s1 + $0x2e4] ss:$16 sps:$4 sm:$0xff]  }
  0x20   :  { %623 = vmatprep.subr.bf16.mxu0 %v984_v33  ;;  %705 = vmatprep.subr.bf16.mxu1 %v986_v34  ;;  %v1082_v33 = vld [vmem:[%s1427_s1 + $0x2ec] ss:$16 sps:$4 sm:$0xff]   ;;  %v1077_v34 = vld [vmem:[%s1427_s1 + $0x2e0] ss:$16 sps:$4 sm:$0xff]  }
  0x23   :  { %624 = vmatpush1.bf16.msra.mxu0 %v988_v35  ;;  %706 = vmatpush1.bf16.msra.mxu1 %v989_v36  ;;  %v1080_v35 = vld [vmem:[%s1427_s1 + $0x2e8] ss:$16 sps:$4 sm:$0xff]  }
  0x24   :  { %625 = vmatprep.subr.bf16.mxu0 %v990_v37  ;;  %707 = vmatprep.subr.bf16.mxu1 %v992_v38  ;;  %v1034_v36 = vld [vmem:[%s1428_s0 + $0x8] ss:$0 sps:$4 sm:$0xff]  }
  0x27   :  { %626 = vmatpush1.bf16.msra.mxu0 %v994_v39  ;;  %708 = vmatpush1.bf16.msra.mxu1 %v995_v40 }
  0x28   :  { %627 = vmatprep.subr.bf16.mxu0 %v996_v41  ;;  %709 = vmatprep.subr.bf16.mxu1 %v998_v42 }
  0x2b   :  { %628 = vmatpush1.bf16.msra.mxu0 %v1000_v43  ;;  %710 = vmatpush1.bf16.msra.mxu1 %v1001_v44 }
  0x2c   :  { %629 = vmatprep.subr.bf16.mxu0 %v1002_v45  ;;  %711 = vmatprep.subr.bf16.mxu1 %v1004_v46 }
  0x2f   :  { %630 = vmatpush1.bf16.msra.mxu0 %v1006_v48  ;;  %712 = vmatpush1.bf16.msra.mxu1 %v1007_v50 }
  0x30   :  { %631 = vmatprep.subr.bf16.mxu0 %v1008_v51  ;;  %713 = vmatprep.subr.bf16.mxu1 %v1010_v52 }
  0x33   :  { %632 = vmatpush1.bf16.msra.mxu0 %v1012_v53  ;;  %714 = vmatpush1.bf16.msra.mxu1 %v1013_v54 }
  0x34   :  { %633 = vmatprep.subr.bf16.mxu0 %v1014_v55  ;;  %715 = vmatprep.subr.bf16.mxu1 %v1016_v56 }
  0x37   :  { %634 = vmatpush1.bf16.msra.mxu0 %v1018_v57  ;;  %716 = vmatpush1.bf16.msra.mxu1 %v1019_v58 }
  0x38   :  { %635 = vmatprep.subr.bf16.mxu0 %v1020_v59  ;;  %717 = vmatprep.subr.bf16.mxu1 %v1022_v60 }
  0x3b   :  { %636 = vmatpush1.bf16.msra.mxu0 %v1024_v61  ;;  %718 = vmatpush1.bf16.msra.mxu1 %v1025_v62 }
  0x3c   :  { %637 = vmatprep.subr.bf16.mxu0 %v1026_v63  ;;  %719 = vmatprep.subr.bf16.mxu1 %v1028_v0  ;;  %v793_v0 = vld [vmem:[%s1429_s2] sm:$0xff] }
  0x3f   :  { %638 = vmatpush1.bf16.msra.mxu0 %v1030_v2  ;;  %720 = vmatpush1.bf16.msra.mxu1 %v1031_v3 }
  0x40   :  { %648 = vmatprep.subr.bf16.mxu0 %v1037_v4  ;;  %730 = vmatprep.subr.bf16.mxu1 %v1040_v5  ;;  %v804_v4 = vld [vmem:[%s1430_s3] sm:$0xff] }
  0x42   :  { %640 = vmatmul.mubr.bf16.vlgmr.msra.gmra.mrb[0].mxu0 %v826_v6  ;;  %722 = vmatmul.mubr.bf16.vlgmr.msra.gmra.mrb[0].mxu1 %v826_v6 }
  0x43   :  { %649 = vmatpush1.bf16.msra.mxu0 %v1035_v7  ;;  %731 = vmatpush1.bf16.msra.mxu1 %v1038_v8 }
  0x44   :  { %650 = vmatprep.subr.bf16.mxu0 %v1043_v9  ;;  %732 = vmatprep.subr.bf16.mxu1 %v1046_v10 }
  0x45   :  { %680 = vmatprep.mubr.bf16.mxu0 %v1085_v1  ;;  %762 = vmatprep.mubr.bf16.mxu1 %v1085_v1  ;;  %v1058_v1 = vld [vmem:[%s1427_s1 + $0x26c] ss:$16 sps:$4 sm:$0xff]  }
  0x47   :  { %651 = vmatpush1.bf16.msra.mxu0 %v1041_v11  ;;  %733 = vmatpush1.bf16.msra.mxu1 %v1044_v12 }
  0x48   :  { %652 = vmatprep.subr.bf16.mxu0 %v1049_v13  ;;  %734 = vmatprep.subr.bf16.mxu1 %v1052_v14 }
  0x4b   :  { %653 = vmatpush1.bf16.msra.mxu0 %v1047_v15  ;;  %735 = vmatpush1.bf16.msra.mxu1 %v1050_v16 }
  0x4c   :  { %654 = vmatprep.subr.bf16.mxu0 %v1055_v17  ;;  %736 = vmatprep.subr.bf16.mxu1 %v1058_v1 }
  0x4f   :  { %655 = vmatpush1.bf16.msra.mxu0 %v1053_v18  ;;  %737 = vmatpush1.bf16.msra.mxu1 %v1056_v19 }
  0x50   :  { %656 = vmatprep.subr.bf16.mxu0 %v1061_v20  ;;  %738 = vmatprep.subr.bf16.mxu1 %v1064_v21 }
  0x53   :  { %657 = vmatpush1.bf16.msra.mxu0 %v1059_v22  ;;  %739 = vmatpush1.bf16.msra.mxu1 %v1062_v23 }
  0x54   :  { %658 = vmatprep.subr.bf16.mxu0 %v1067_v24  ;;  %740 = vmatprep.subr.bf16.mxu1 %v1070_v25 }
  0x57   :  { %659 = vmatpush1.bf16.msra.mxu0 %v1065_v26  ;;  %741 = vmatpush1.bf16.msra.mxu1 %v1068_v27 }
  0x58   :  { %660 = vmatprep.subr.bf16.mxu0 %v1073_v28  ;;  %742 = vmatprep.subr.bf16.mxu1 %v1076_v29 }
  0x5b   :  { %661 = vmatpush1.bf16.msra.mxu0 %v1071_v30  ;;  %743 = vmatpush1.bf16.msra.mxu1 %v1074_v31 }
  0x5c   :  { %662 = vmatprep.subr.bf16.mxu0 %v1079_v32  ;;  %744 = vmatprep.subr.bf16.mxu1 %v1082_v33 }
  0x5f   :  { %663 = vmatpush1.bf16.msra.mxu0 %v1077_v34  ;;  %745 = vmatpush1.bf16.msra.mxu1 %v1080_v35 }
  0x62   :  { %681 = vmatmul.mubr.bf16.vlgmr.msra.gmra.mrb[0].mxu0 %v1034_v36  ;;  %763 = vmatmul.mubr.bf16.vlgmr.msra.gmra.mrb[0].mxu1 %v1034_v36 }
 0x135   :  { %v682_v37 = vpop.f32.mrb[0].mxu0  ;;  %v764_v38 = vpop.f32.mrb[0].mxu1 }
 0x136   :  { %v684_v39 = vpop.f32.mrb[1].mxu0  ;;  %v766_v40 = vpop.f32.mrb[1].mxu1 }
 0x137   :  { %v771_v41 = vadd.f32 %v684_v39, %v682_v37  ;;  %v686_v42 = vpop.f32.mrb[2].mxu0  ;;  %v768_v43 = vpop.f32.mrb[2].mxu1 }
 0x138   :  { %v687_v44 = vpop.f32.mrb[3].mxu0  ;;  %v769_v45 = vpop.f32.mrb[3].mxu1 }
 0x139   :  { %v772_v46 = vadd.f32 %v771_v41, %v764_v38 }
 0x13b   :  { %v773_v47 = vadd.f32 %v772_v46, %v766_v40 }
 0x13d   :  { %774 = vadd.xlane.f32.xlu0 %v773_v47 }
 0x1ca   :  { %v775_v48 = vpop.xlane.xlu0 %774 }
 0x1cb   :  { %v776_v49 = vmul.f32 0.001953125, %v775_v48 }
 0x1cd   :  { %v777_v50 = vsub.f32 %v682_v37, %v776_v49  ;;  %v778_v51 = vsub.f32 %v684_v39, %v776_v49  ;;  %v779_v52 = vsub.f32 %v764_v38, %v776_v49  ;;  %v780_v53 = vsub.f32 %v766_v40, %v776_v49 }
 0x1cf   :  { %v781_v54 = vmul.f32 %v777_v50, %v777_v50  ;;  %v782_v55 = vmul.f32 %v778_v51, %v778_v51  ;;  %v783_v56 = vmul.f32 %v779_v52, %v779_v52  ;;  %v784_v58 = vmul.f32 %v780_v53, %v780_v53 }
 0x1d1   :  { %v785_v57 = vadd.f32 %v782_v55, %v781_v54 }
 0x1d3   :  { %v786_v59 = vadd.f32 %v785_v57, %v783_v56 }
 0x1d5   :  { %v787_v60 = vadd.f32 %v786_v59, %v784_v58 }
 0x1d7   :  { %788 = vadd.xlane.f32.xlu0 %v787_v60 }
 0x264   :  { %v789_v61 = vpop.xlane.xlu0 %788 }
 0x265   :  { %v790_v62 = vmul.f32 0.001953125, %v789_v61 }
 0x267   :  { %v791_v63 = vadd.f32 1e-05, %v790_v62 }
 0x269   :  { %1083 = vrsqrt.f32 %v791_v63 }
 0x273   :  { %v1084_v2 = vpop.eup %1083 }
 0x274   :  { %v794_v3 = vmul.f32 %v1084_v2, %v793_v0 }
 0x276   :  { %797 = vperm.xlu1 %934, %v794_v3  }
 0x27a   :  { %807 = vperm.xlu1 %934, %v804_v4  }
 0x2f5   :  { %v798_v5 = vpop.permute.xlu1 %797 }
 0x2f6   :  { %v800_v6 = vmul.f32 %v798_v5, %v777_v50  ;;  %v801_v7 = vmul.f32 %v798_v5, %v778_v51  ;;  %v802_v8 = vmul.f32 %v798_v5, %v779_v52  ;;  %v803_v9 = vmul.f32 %v798_v5, %v780_v53 }
 0x2f9   :  { %v808_v10 = vpop.permute.xlu1 %807 }
 0x2fa   :  { %v810_v11 = vadd.f32 %v808_v10, %v800_v6  ;;  %v811_v12 = vadd.f32 %v808_v10, %v801_v7  ;;  %v812_v13 = vadd.f32 %v808_v10, %v802_v8  ;;  %v813_v14 = vadd.f32 %v808_v10, %v803_v9 }
 0x2fc   :  { %v814_v15 = vmax.f32 %v810_v11, 0.0  ;;  %v815_v16 = vmax.f32 %v811_v12, 0.0  ;;  %v816_v17 = vmax.f32 %v812_v13, 0.0  ;;  %v817_v1 = vmax.f32 %v813_v14, 0.0 }
 0x2fe   :  { %818 = vst [vmem:[%s1431_s4] sm:$0xff] %v814_v15  ;;  %819 = vst [vmem:[%s1431_s4 + $0x8] sm:$0xff] %v815_v16 }
 0x2ff   :  { %820 = vst [vmem:[%s1431_s4 + $0x10] sm:$0xff] %v816_v17  ;;  %821 = vst [vmem:[%s1431_s4 + $0x18] sm:$0xff] %v817_v1 }

// kernel: forward.7
= control target key start
LH: loop header
LB: loop body
LE: loop exit
PB: predicated region body
PF: predicated region fallthrough
CT: control target
= control target key end

     0   :  { %v1462_v3 = vmov 0   ;;  %s2023_s1 = inlined_call_operand.vmem [shape: bf16[128,2048], index: 1, kind: input, shape index: {}]   ;;  %s2024_s0 = inlined_call_operand.vmem [shape: bf16[3,128], index: 0, kind: input, shape index: {}]   ;;  %s2025_s2 = inlined_call_operand.vmem [shape: f32[3,1], index: 2, kind: input, shape index: {}]   ;;  %s2026_s3 = inlined_call_operand.vmem [shape: f32[1,2048], index: 3, kind: input, shape index: {}]   ;;  %s2027_s4 = inlined_call_operand.vmem [shape: f32[3,2048], index: 4, kind: output, shape index: {}]  }
   0x1   :  { %v19_v0 = vld [vmem:[%s2023_s1] sm:$0xff]  ;;  %v20_v2 = vld [vmem:[%s2023_s1 + $0x8] sm:$0xff]  ;;  %825 = vmatprep.mubr.bf16.mxu0 %v1462_v3  ;;  %866 = vmatprep.mubr.bf16.mxu1 %v1462_v3  ;;  %v21_v63 = vld [vmem:[%s2023_s1 + $0x10] sm:$0xff] }
   0x2   :  { %v27_v1 = vld [vmem:[%s2023_s1 + $0x40] sm:$0xff]  ;;  %v28_v5 = vld [vmem:[%s2023_s1 + $0x48] sm:$0xff]  ;;  %1429 = vset.pattern.permute.xlu0 %v1462_v3 }
   0x3   :  { %v1301_v4 = vcombine.high %v19_v0, %v27_v1  ;;  %v1300_v6 = vcombine.low %v19_v0, %v27_v1  ;;  %v35_v7 = vld [vmem:[%s2023_s1 + $0x80] sm:$0xff]  ;;  %v1303_v9 = vcombine.high %v20_v2, %v28_v5  ;;  %v1302_v10 = vcombine.low %v20_v2, %v28_v5  ;;  %v36_v12 = vld [vmem:[%s2023_s1 + $0x88] sm:$0xff]  ;;  %v29_v0 = vld [vmem:[%s2023_s1 + $0x50] sm:$0xff] }
   0x4   :  { %v43_v8 = vld [vmem:[%s2023_s1 + $0xc0] sm:$0xff]  ;;  %v44_v13 = vld [vmem:[%s2023_s1 + $0xc8] sm:$0xff]  ;;  %v22_v1 = vld [vmem:[%s2023_s1 + $0x18] sm:$0xff] }
   0x5   :  { %v1317_v11 = vcombine.high %v35_v7, %v43_v8  ;;  %v51_v14 = vld [vmem:[%s2023_s1 + $0x100] sm:$0xff]  ;;  %793 = vmatprep.subr.bf16.mxu0 %v1301_v4  ;;  %v1319_v15 = vcombine.high %v36_v12, %v44_v13  ;;  %v52_v17 = vld [vmem:[%s2023_s1 + $0x108] sm:$0xff]  ;;  %834 = vmatprep.subr.bf16.mxu1 %v1303_v9  ;;  %v1316_v19 = vcombine.low %v35_v7, %v43_v8  ;;  %v30_v2 = vld [vmem:[%s2023_s1 + $0x58] sm:$0xff] }
   0x6   :  { %v59_v16 = vld [vmem:[%s2023_s1 + $0x140] sm:$0xff]  ;;  %v60_v18 = vld [vmem:[%s2023_s1 + $0x148] sm:$0xff]  ;;  %794 = vmatpush1.bf16.msra.mxu0 %v1300_v6  ;;  %835 = vmatpush1.bf16.msra.mxu1 %v1302_v10  ;;  %v1318_v20 = vcombine.low %v36_v12, %v44_v13  ;;  %v1305_v6 = vcombine.high %v21_v63, %v29_v0  ;;  %v1307_v7 = vcombine.high %v22_v1, %v30_v2  ;;  %v37_v8 = vld [vmem:[%s2023_s1 + $0x90] sm:$0xff] }
   0x7   :  { %795 = vmatprep.subr.bf16.mxu0 %v1317_v11  ;;  %v1333_v21 = vcombine.high %v51_v14, %v59_v16  ;;  %836 = vmatprep.subr.bf16.mxu1 %v1319_v15  ;;  %v1335_v22 = vcombine.high %v52_v17, %v60_v18  ;;  %v67_v23 = vld [vmem:[%s2023_s1 + $0x180] sm:$0xff]  ;;  %v68_v25 = vld [vmem:[%s2023_s1 + $0x188] sm:$0xff]  ;;  %v1332_v27 = vcombine.low %v51_v14, %v59_v16  ;;  %v45_v9 = vld [vmem:[%s2023_s1 + $0xd0] sm:$0xff] }
   0x8   :  { %v75_v24 = vld [vmem:[%s2023_s1 + $0x1c0] sm:$0xff]  ;;  %v76_v26 = vld [vmem:[%s2023_s1 + $0x1c8] sm:$0xff]  ;;  %v1334_v28 = vcombine.low %v52_v17, %v60_v18  ;;  %v38_v10 = vld [vmem:[%s2023_s1 + $0x98] sm:$0xff]  ;;  %v1304_v13 = vcombine.low %v21_v63, %v29_v0  ;;  %v1306_v14 = vcombine.low %v22_v1, %v30_v2  ;;  %v1321_v15 = vcombine.high %v37_v8, %v45_v9 }
   0x9   :  { %v1349_v29 = vcombine.high %v67_v23, %v75_v24  ;;  %v1351_v30 = vcombine.high %v68_v25, %v76_v26  ;;  %v83_v31 = vld [vmem:[%s2023_s1 + $0x200] sm:$0xff]  ;;  %v84_v33 = vld [vmem:[%s2023_s1 + $0x208] sm:$0xff]  ;;  %v1348_v35 = vcombine.low %v67_v23, %v75_v24  ;;  %v1350_v36 = vcombine.low %v68_v25, %v76_v26  ;;  %v46_v11 = vld [vmem:[%s2023_s1 + $0xd8] sm:$0xff] }
   0xa   :  { %796 = vmatpush1.bf16.msra.mxu0 %v1316_v19  ;;  %837 = vmatpush1.bf16.msra.mxu1 %v1318_v20  ;;  %v91_v32 = vld [vmem:[%s2023_s1 + $0x240] sm:$0xff]  ;;  %v92_v34 = vld [vmem:[%s2023_s1 + $0x248] sm:$0xff]  ;;  %v1323_v16 = vcombine.high %v38_v10, %v46_v11  ;;  %v53_v17 = vld [vmem:[%s2023_s1 + $0x110] sm:$0xff] }
   0xb   :  { %797 = vmatprep.subr.bf16.mxu0 %v1333_v21  ;;  %838 = vmatprep.subr.bf16.mxu1 %v1335_v22  ;;  %v1365_v37 = vcombine.high %v83_v31, %v91_v32  ;;  %v1367_v38 = vcombine.high %v84_v33, %v92_v34  ;;  %v99_v39 = vld [vmem:[%s2023_s1 + $0x280] sm:$0xff]  ;;  %v100_v41 = vld [vmem:[%s2023_s1 + $0x288] sm:$0xff]  ;;  %v1364_v43 = vcombine.low %v83_v31, %v91_v32  ;;  %v61_v18 = vld [vmem:[%s2023_s1 + $0x150] sm:$0xff] }
   0xc   :  { %v107_v40 = vld [vmem:[%s2023_s1 + $0x2c0] sm:$0xff]  ;;  %v108_v42 = vld [vmem:[%s2023_s1 + $0x2c8] sm:$0xff]  ;;  %v1366_v44 = vcombine.low %v84_v33, %v92_v34  ;;  %v54_v19 = vld [vmem:[%s2023_s1 + $0x118] sm:$0xff]  ;;  %v1320_v21 = vcombine.low %v37_v8, %v45_v9  ;;  %v1322_v22 = vcombine.low %v38_v10, %v46_v11  ;;  %v1337_v23 = vcombine.high %v53_v17, %v61_v18 }
   0xd   :  { %v1381_v45 = vcombine.high %v99_v39, %v107_v40  ;;  %v1383_v46 = vcombine.high %v100_v41, %v108_v42  ;;  %v115_v47 = vld [vmem:[%s2023_s1 + $0x300] sm:$0xff]  ;;  %v116_v49 = vld [vmem:[%s2023_s1 + $0x308] sm:$0xff]  ;;  %v1380_v51 = vcombine.low %v99_v39, %v107_v40  ;;  %v1382_v52 = vcombine.low %v100_v41, %v108_v42  ;;  %v62_v20 = vld [vmem:[%s2023_s1 + $0x158] sm:$0xff] }
   0xe   :  { %798 = vmatpush1.bf16.msra.mxu0 %v1332_v27  ;;  %839 = vmatpush1.bf16.msra.mxu1 %v1334_v28  ;;  %v123_v48 = vld [vmem:[%s2023_s1 + $0x340] sm:$0xff]  ;;  %v124_v50 = vld [vmem:[%s2023_s1 + $0x348] sm:$0xff]  ;;  %v1339_v24 = vcombine.high %v54_v19, %v62_v20  ;;  %v69_v25 = vld [vmem:[%s2023_s1 + $0x190] sm:$0xff]  ;;  %v1338_v31 = vcombine.low %v54_v19, %v62_v20 }
   0xf   :  { %799 = vmatprep.subr.bf16.mxu0 %v1349_v29  ;;  %840 = vmatprep.subr.bf16.mxu1 %v1351_v30  ;;  %v1397_v53 = vcombine.high %v115_v47, %v123_v48  ;;  %v1399_v54 = vcombine.high %v116_v49, %v124_v50  ;;  %v131_v55 = vld [vmem:[%s2023_s1 + $0x380] sm:$0xff]  ;;  %v132_v57 = vld [vmem:[%s2023_s1 + $0x388] sm:$0xff]  ;;  %v1396_v59 = vcombine.low %v115_v47, %v123_v48  ;;  %v77_v26 = vld [vmem:[%s2023_s1 + $0x1d0] sm:$0xff] }
  0x10   :  { %v139_v56 = vld [vmem:[%s2023_s1 + $0x3c0] sm:$0xff]  ;;  %v140_v58 = vld [vmem:[%s2023_s1 + $0x3c8] sm:$0xff]  ;;  %v1398_v60 = vcombine.low %v116_v49, %v124_v50  ;;  %v70_v27 = vld [vmem:[%s2023_s1 + $0x198] sm:$0xff]  ;;  %v1336_v29 = vcombine.low %v53_v17, %v61_v18  ;;  %v1353_v32 = vcombine.high %v69_v25, %v77_v26 }
  0x11   :  { %v1413_v61 = vcombine.high %v131_v55, %v139_v56  ;;  %v1415_v62 = vcombine.high %v132_v57, %v140_v58  ;;  %v1412_v4 = vcombine.low %v131_v55, %v139_v56  ;;  %v1414_v5 = vcombine.low %v132_v57, %v140_v58  ;;  %v1614_v12 = vld [vmem:[%s2024_s0] sm:$0x3]  ;;  %v78_v28 = vld [vmem:[%s2023_s1 + $0x1d8] sm:$0xff]  ;;  %v85_v34 = vld [vmem:[%s2023_s1 + $0x210] sm:$0xff] }
  0x12   :  { %800 = vmatpush1.bf16.msra.mxu0 %v1348_v35  ;;  %841 = vmatpush1.bf16.msra.mxu1 %v1350_v36  ;;  %v147_v30 = vld [vmem:[%s2025_s2] sm:$0x7]  ;;  %v1355_v33 = vcombine.high %v70_v27, %v78_v28  ;;  %v93_v35 = vld [vmem:[%s2023_s1 + $0x250] sm:$0xff]  ;;  %v86_v36 = vld [vmem:[%s2023_s1 + $0x218] sm:$0xff]  ;;  %v1354_v39 = vcombine.low %v70_v27, %v78_v28 }
  0x13   :  { %801 = vmatprep.subr.bf16.mxu0 %v1365_v37  ;;  %842 = vmatprep.subr.bf16.mxu1 %v1367_v38  ;;  %v94_v37 = vld [vmem:[%s2023_s1 + $0x258] sm:$0xff]  ;;  %v1352_v38 = vcombine.low %v69_v25, %v77_v26  ;;  %v1369_v40 = vcombine.high %v85_v34, %v93_v35  ;;  %v101_v42 = vld [vmem:[%s2023_s1 + $0x290] sm:$0xff]  ;;  %v23_v2 = vld [vmem:[%s2023_s1 + $0x20] sm:$0xff] }
  0x14   :  { %150 = vperm.xlu0 %1429, %v147_v30   ;;  %v1371_v41 = vcombine.high %v86_v36, %v94_v37  ;;  %v1370_v47 = vcombine.low %v86_v36, %v94_v37  ;;  %v117_v50 = vld [vmem:[%s2023_s1 + $0x310] sm:$0xff]  ;;  %v39_v11 = vld [vmem:[%s2023_s1 + $0xa0] sm:$0xff]  ;;  %v72_v30 = vld [vmem:[%s2023_s1 + $0x1a8] sm:$0xff] }
  0x15   :  { %v133_v58 = vld [vmem:[%s2023_s1 + $0x390] sm:$0xff]  ;;  %v55_v20 = vld [vmem:[%s2023_s1 + $0x120] sm:$0xff] }
  0x16   :  { %802 = vmatpush1.bf16.msra.mxu0 %v1364_v43  ;;  %843 = vmatpush1.bf16.msra.mxu1 %v1366_v44  ;;  %v109_v43 = vld [vmem:[%s2023_s1 + $0x2d0] sm:$0xff]  ;;  %v102_v44 = vld [vmem:[%s2023_s1 + $0x298] sm:$0xff]  ;;  %v71_v28 = vld [vmem:[%s2023_s1 + $0x1a0] sm:$0xff] }
  0x17   :  { %803 = vmatprep.subr.bf16.mxu0 %v1381_v45  ;;  %844 = vmatprep.subr.bf16.mxu1 %v1383_v46  ;;  %v110_v45 = vld [vmem:[%s2023_s1 + $0x2d8] sm:$0xff]  ;;  %v1368_v46 = vcombine.low %v85_v34, %v93_v35  ;;  %v1385_v48 = vcombine.high %v101_v42, %v109_v43  ;;  %v87_v36 = vld [vmem:[%s2023_s1 + $0x220] sm:$0xff] }
  0x18   :  { %v1387_v49 = vcombine.high %v102_v44, %v110_v45  ;;  %v1386_v55 = vcombine.low %v102_v44, %v110_v45  ;;  %v95_v37 = vld [vmem:[%s2023_s1 + $0x260] sm:$0xff] }
  0x19   :  { %v103_v44 = vld [vmem:[%s2023_s1 + $0x2a0] sm:$0xff] }
  0x1a   :  { %804 = vmatpush1.bf16.msra.mxu0 %v1380_v51  ;;  %845 = vmatpush1.bf16.msra.mxu1 %v1382_v52  ;;  %v125_v51 = vld [vmem:[%s2023_s1 + $0x350] sm:$0xff]  ;;  %v118_v52 = vld [vmem:[%s2023_s1 + $0x318] sm:$0xff]  ;;  %v111_v45 = vld [vmem:[%s2023_s1 + $0x2e0] sm:$0xff] }
  0x1b   :  { %805 = vmatprep.subr.bf16.mxu0 %v1397_v53  ;;  %846 = vmatprep.subr.bf16.mxu1 %v1399_v54  ;;  %v126_v53 = vld [vmem:[%s2023_s1 + $0x358] sm:$0xff]  ;;  %v1384_v54 = vcombine.low %v101_v42, %v109_v43  ;;  %v1401_v56 = vcombine.high %v117_v50, %v125_v51  ;;  %v1373_v42 = vcombine.high %v87_v36, %v95_v37 }
  0x1c   :  { %v1403_v57 = vcombine.high %v118_v52, %v126_v53  ;;  %v1402_v63 = vcombine.low %v118_v52, %v126_v53  ;;  %v119_v52 = vld [vmem:[%s2023_s1 + $0x320] sm:$0xff] }
  0x1d   :  { %v127_v53 = vld [vmem:[%s2023_s1 + $0x360] sm:$0xff] }
  0x1e   :  { %806 = vmatpush1.bf16.msra.mxu0 %v1396_v59  ;;  %847 = vmatpush1.bf16.msra.mxu1 %v1398_v60  ;;  %v141_v59 = vld [vmem:[%s2023_s1 + $0x3d0] sm:$0xff]  ;;  %v134_v60 = vld [vmem:[%s2023_s1 + $0x398] sm:$0xff] }
  0x1f   :  { %807 = vmatprep.subr.bf16.mxu0 %v1413_v61  ;;  %848 = vmatprep.subr.bf16.mxu1 %v1415_v62  ;;  %v142_v61 = vld [vmem:[%s2023_s1 + $0x3d8] sm:$0xff]  ;;  %v1400_v62 = vcombine.low %v117_v50, %v125_v51  ;;  %v1417_v0 = vcombine.high %v133_v58, %v141_v59  ;;  %v1389_v50 = vcombine.high %v103_v44, %v111_v45 }
  0x20   :  { %v1419_v1 = vcombine.high %v134_v60, %v142_v61  ;;  %v1418_v8 = vcombine.low %v134_v60, %v142_v61  ;;  %v135_v60 = vld [vmem:[%s2023_s1 + $0x3a0] sm:$0xff] }
  0x21   :  { %v143_v61 = vld [vmem:[%s2023_s1 + $0x3e0] sm:$0xff] }
  0x22   :  { %808 = vmatpush1.bf16.msra.mxu0 %v1412_v4  ;;  %849 = vmatpush1.bf16.msra.mxu1 %v1414_v5  ;;  %v31_v4 = vld [vmem:[%s2023_s1 + $0x60] sm:$0xff]  ;;  %v24_v5 = vld [vmem:[%s2023_s1 + $0x28] sm:$0xff] }
  0x23   :  { %875 = vmatprep.subr.bf16.mxu0 %v1305_v6  ;;  %916 = vmatprep.subr.bf16.mxu1 %v1307_v7  ;;  %v32_v6 = vld [vmem:[%s2023_s1 + $0x68] sm:$0xff]  ;;  %v1416_v7 = vcombine.low %v133_v58, %v141_v59  ;;  %v1309_v9 = vcombine.high %v23_v2, %v31_v4  ;;  %v1405_v58 = vcombine.high %v119_v52, %v127_v53 }
  0x24   :  { %v1311_v10 = vcombine.high %v24_v5, %v32_v6  ;;  %v1310_v17 = vcombine.low %v24_v5, %v32_v6  ;;  %v25_v5 = vld [vmem:[%s2023_s1 + $0x30] sm:$0xff] }
  0x25   :  { %826 = vmatmul.mubr.bf16.vlgmr.msra.gmra.mrb[0].mxu0 %v1614_v12  ;;  %867 = vmatmul.mubr.bf16.vlgmr.msra.gmra.mrb[0].mxu1 %v1614_v12  ;;  %v33_v6 = vld [vmem:[%s2023_s1 + $0x70] sm:$0xff] }
  0x26   :  { %876 = vmatpush1.bf16.msra.mxu0 %v1304_v13  ;;  %917 = vmatpush1.bf16.msra.mxu1 %v1306_v14  ;;  %v47_v13 = vld [vmem:[%s2023_s1 + $0xe0] sm:$0xff]  ;;  %v40_v14 = vld [vmem:[%s2023_s1 + $0xa8] sm:$0xff] }
  0x27   :  { %877 = vmatprep.subr.bf16.mxu0 %v1321_v15  ;;  %918 = vmatprep.subr.bf16.mxu1 %v1323_v16  ;;  %v48_v15 = vld [vmem:[%s2023_s1 + $0xe8] sm:$0xff]  ;;  %v1308_v16 = vcombine.low %v23_v2, %v31_v4  ;;  %v1325_v18 = vcombine.high %v39_v11, %v47_v13  ;;  %v1421_v2 = vcombine.high %v135_v60, %v143_v61 }
  0x28   :  { %907 = vmatprep.mubr.bf16.mxu0 %v1462_v3  ;;  %948 = vmatprep.mubr.bf16.mxu1 %v1462_v3  ;;  %v1327_v19 = vcombine.high %v40_v14, %v48_v15  ;;  %v1326_v25 = vcombine.low %v40_v14, %v48_v15  ;;  %v41_v14 = vld [vmem:[%s2023_s1 + $0xb0] sm:$0xff] }
  0x29   :  { %v49_v15 = vld [vmem:[%s2023_s1 + $0xf0] sm:$0xff] }
  0x2a   :  { %878 = vmatpush1.bf16.msra.mxu0 %v1320_v21  ;;  %919 = vmatpush1.bf16.msra.mxu1 %v1322_v22  ;;  %v63_v21 = vld [vmem:[%s2023_s1 + $0x160] sm:$0xff]  ;;  %v56_v22 = vld [vmem:[%s2023_s1 + $0x128] sm:$0xff] }
  0x2b   :  { %879 = vmatprep.subr.bf16.mxu0 %v1337_v23  ;;  %920 = vmatprep.subr.bf16.mxu1 %v1339_v24  ;;  %v64_v23 = vld [vmem:[%s2023_s1 + $0x168] sm:$0xff]  ;;  %v1324_v24 = vcombine.low %v39_v11, %v47_v13  ;;  %v1341_v26 = vcombine.high %v55_v20, %v63_v21  ;;  %v1313_v11 = vcombine.high %v25_v5, %v33_v6 }
  0x2c   :  { %v1343_v27 = vcombine.high %v56_v22, %v64_v23 }
  0x2e   :  { %880 = vmatpush1.bf16.msra.mxu0 %v1336_v29  ;;  %921 = vmatpush1.bf16.msra.mxu1 %v1338_v31  ;;  %v79_v29 = vld [vmem:[%s2023_s1 + $0x1e0] sm:$0xff]  ;;  %v80_v31 = vld [vmem:[%s2023_s1 + $0x1e8] sm:$0xff] }
  0x2f   :  { %881 = vmatprep.subr.bf16.mxu0 %v1353_v32  ;;  %922 = vmatprep.subr.bf16.mxu1 %v1355_v33  ;;  %v1340_v32 = vcombine.low %v55_v20, %v63_v21  ;;  %v1342_v33 = vcombine.low %v56_v22, %v64_v23  ;;  %v1357_v34 = vcombine.high %v71_v28, %v79_v29  ;;  %v57_v22 = vld [vmem:[%s2023_s1 + $0x130] sm:$0xff] }
  0x30   :  { %v1359_v35 = vcombine.high %v72_v30, %v80_v31  ;;  %v1329_v20 = vcombine.high %v41_v14, %v49_v15  ;;  %v65_v23 = vld [vmem:[%s2023_s1 + $0x170] sm:$0xff] }
  0x32   :  { %882 = vmatpush1.bf16.msra.mxu0 %v1352_v38  ;;  %923 = vmatpush1.bf16.msra.mxu1 %v1354_v39  ;;  %v88_v38 = vld [vmem:[%s2023_s1 + $0x228] sm:$0xff] }
  0x33   :  { %883 = vmatprep.subr.bf16.mxu0 %v1369_v40  ;;  %924 = vmatprep.subr.bf16.mxu1 %v1371_v41  ;;  %v96_v39 = vld [vmem:[%s2023_s1 + $0x268] sm:$0xff]  ;;  %v1356_v40 = vcombine.low %v71_v28, %v79_v29  ;;  %v1358_v41 = vcombine.low %v72_v30, %v80_v31  ;;  %v1345_v28 = vcombine.high %v57_v22, %v65_v23  ;;  %v73_v30 = vld [vmem:[%s2023_s1 + $0x1b0] sm:$0xff] }
  0x34   :  { %v1375_v43 = vcombine.high %v88_v38, %v96_v39  ;;  %v81_v31 = vld [vmem:[%s2023_s1 + $0x1f0] sm:$0xff] }
  0x36   :  { %884 = vmatpush1.bf16.msra.mxu0 %v1368_v46  ;;  %925 = vmatpush1.bf16.msra.mxu1 %v1370_v47  ;;  %v104_v46 = vld [vmem:[%s2023_s1 + $0x2a8] sm:$0xff] }
  0x37   :  { %885 = vmatprep.subr.bf16.mxu0 %v1385_v48  ;;  %926 = vmatprep.subr.bf16.mxu1 %v1387_v49  ;;  %v112_v47 = vld [vmem:[%s2023_s1 + $0x2e8] sm:$0xff]  ;;  %v1372_v48 = vcombine.low %v87_v36, %v95_v37  ;;  %v1374_v49 = vcombine.low %v88_v38, %v96_v39  ;;  %v1361_v36 = vcombine.high %v73_v30, %v81_v31  ;;  %v89_v38 = vld [vmem:[%s2023_s1 + $0x230] sm:$0xff] }
  0x38   :  { %v1391_v51 = vcombine.high %v104_v46, %v112_v47  ;;  %v97_v39 = vld [vmem:[%s2023_s1 + $0x270] sm:$0xff] }
  0x3a   :  { %886 = vmatpush1.bf16.msra.mxu0 %v1384_v54  ;;  %927 = vmatpush1.bf16.msra.mxu1 %v1386_v55  ;;  %v120_v54 = vld [vmem:[%s2023_s1 + $0x328] sm:$0xff] }
  0x3b   :  { %887 = vmatprep.subr.bf16.mxu0 %v1401_v56  ;;  %928 = vmatprep.subr.bf16.mxu1 %v1403_v57  ;;  %v128_v55 = vld [vmem:[%s2023_s1 + $0x368] sm:$0xff]  ;;  %v1388_v56 = vcombine.low %v103_v44, %v111_v45  ;;  %v1390_v57 = vcombine.low %v104_v46, %v112_v47  ;;  %v105_v45 = vld [vmem:[%s2023_s1 + $0x2b0] sm:$0xff]  ;;  %v106_v47 = vld [vmem:[%s2023_s1 + $0x2b8] sm:$0xff] }
  0x3c   :  { %v1407_v59 = vcombine.high %v120_v54, %v128_v55  ;;  %v113_v46 = vld [vmem:[%s2023_s1 + $0x2f0] sm:$0xff] }
  0x3e   :  { %888 = vmatpush1.bf16.msra.mxu0 %v1400_v62  ;;  %929 = vmatpush1.bf16.msra.mxu1 %v1402_v63  ;;  %v136_v62 = vld [vmem:[%s2023_s1 + $0x3a8] sm:$0xff] }
  0x3f   :  { %889 = vmatprep.subr.bf16.mxu0 %v1417_v0  ;;  %930 = vmatprep.subr.bf16.mxu1 %v1419_v1  ;;  %v144_v63 = vld [vmem:[%s2023_s1 + $0x3e8] sm:$0xff]  ;;  %v1404_v0 = vcombine.low %v119_v52, %v127_v53  ;;  %v1406_v1 = vcombine.low %v120_v54, %v128_v55  ;;  %v121_v53 = vld [vmem:[%s2023_s1 + $0x330] sm:$0xff]  ;;  %v122_v55 = vld [vmem:[%s2023_s1 + $0x338] sm:$0xff] }
  0x40   :  { %v1423_v4 = vcombine.high %v136_v62, %v144_v63  ;;  %v129_v54 = vld [vmem:[%s2023_s1 + $0x370] sm:$0xff] }
  0x42   :  { %890 = vmatpush1.bf16.msra.mxu0 %v1416_v7  ;;  %931 = vmatpush1.bf16.msra.mxu1 %v1418_v8  ;;  %v26_v7 = vld [vmem:[%s2023_s1 + $0x38] sm:$0xff] }
  0x43   :  { %957 = vmatprep.subr.bf16.mxu0 %v1309_v9  ;;  %998 = vmatprep.subr.bf16.mxu1 %v1311_v10  ;;  %v34_v8 = vld [vmem:[%s2023_s1 + $0x78] sm:$0xff]  ;;  %v1420_v9 = vcombine.low %v135_v60, %v143_v61  ;;  %v1422_v10 = vcombine.low %v136_v62, %v144_v63  ;;  %v137_v61 = vld [vmem:[%s2023_s1 + $0x3b0] sm:$0xff] }
  0x44   :  { %v1315_v13 = vcombine.high %v26_v7, %v34_v8  ;;  %v145_v62 = vld [vmem:[%s2023_s1 + $0x3f0] sm:$0xff]  ;;  %v138_v63 = vld [vmem:[%s2023_s1 + $0x3b8] sm:$0xff] }
  0x45   :  { %908 = vmatmul.mubr.bf16.vlgmr.msra.gmra.mrb[4].mxu0 %v1614_v12  ;;  %949 = vmatmul.mubr.bf16.vlgmr.msra.gmra.mrb[4].mxu1 %v1614_v12 }
  0x46   :  { %958 = vmatpush1.bf16.msra.mxu0 %v1308_v16  ;;  %999 = vmatpush1.bf16.msra.mxu1 %v1310_v17  ;;  %v42_v16 = vld [vmem:[%s2023_s1 + $0xb8] sm:$0xff] }
  0x47   :  { %959 = vmatprep.subr.bf16.mxu0 %v1325_v18  ;;  %1000 = vmatprep.subr.bf16.mxu1 %v1327_v19  ;;  %v50_v17 = vld [vmem:[%s2023_s1 + $0xf8] sm:$0xff]  ;;  %v1312_v18 = vcombine.low %v25_v5, %v33_v6  ;;  %v1314_v19 = vcombine.low %v26_v7, %v34_v8  ;;  %v1424_v6 = vcombine.low %v137_v61, %v145_v62  ;;  %v1121_v8 = vlaneseq }
  0x48   :  { %989 = vmatprep.mubr.bf16.mxu0 %v1462_v3  ;;  %1030 = vmatprep.mubr.bf16.mxu1 %v1462_v3  ;;  %v1331_v21 = vcombine.high %v42_v16, %v50_v17 }
  0x4a   :  { %960 = vmatpush1.bf16.msra.mxu0 %v1324_v24  ;;  %1001 = vmatpush1.bf16.msra.mxu1 %v1326_v25  ;;  %v58_v24 = vld [vmem:[%s2023_s1 + $0x138] sm:$0xff] }
  0x4b   :  { %961 = vmatprep.subr.bf16.mxu0 %v1341_v26  ;;  %1002 = vmatprep.subr.bf16.mxu1 %v1343_v27  ;;  %v66_v25 = vld [vmem:[%s2023_s1 + $0x178] sm:$0xff]  ;;  %v1328_v26 = vcombine.low %v41_v14, %v49_v15  ;;  %v1330_v27 = vcombine.low %v42_v16, %v50_v17 }
  0x4c   :  { %v1347_v29 = vcombine.high %v58_v24, %v66_v25 }
  0x4e   :  { %962 = vmatpush1.bf16.msra.mxu0 %v1340_v32  ;;  %1003 = vmatpush1.bf16.msra.mxu1 %v1342_v33  ;;  %v74_v32 = vld [vmem:[%s2023_s1 + $0x1b8] sm:$0xff] }
  0x4f   :  { %963 = vmatprep.subr.bf16.mxu0 %v1357_v34  ;;  %1004 = vmatprep.subr.bf16.mxu1 %v1359_v35  ;;  %v82_v33 = vld [vmem:[%s2023_s1 + $0x1f8] sm:$0xff]  ;;  %v1344_v34 = vcombine.low %v57_v22, %v65_v23  ;;  %v1346_v35 = vcombine.low %v58_v24, %v66_v25  ;;  %v1124_v25 = vld [vmem:[%s2026_s3] sm:$0xff] }
  0x50   :  { %v1363_v37 = vcombine.high %v74_v32, %v82_v33 }
  0x52   :  { %964 = vmatpush1.bf16.msra.mxu0 %v1356_v40  ;;  %1005 = vmatpush1.bf16.msra.mxu1 %v1358_v41  ;;  %v98_v40 = vld [vmem:[%s2023_s1 + $0x278] sm:$0xff]  ;;  %v1360_v41 = vcombine.low %v73_v30, %v81_v31 }
  0x53   :  { %965 = vmatprep.subr.bf16.mxu0 %v1373_v42  ;;  %1006 = vmatprep.subr.bf16.mxu1 %v1375_v43  ;;  %v1362_v42 = vcombine.low %v74_v32, %v82_v33  ;;  %v1377_v43 = vcombine.high %v89_v38, %v97_v39 }
  0x56   :  { %966 = vmatpush1.bf16.msra.mxu0 %v1372_v48  ;;  %1007 = vmatpush1.bf16.msra.mxu1 %v1374_v49  ;;  %v114_v48 = vld [vmem:[%s2023_s1 + $0x2f8] sm:$0xff]  ;;  %v1376_v49 = vcombine.low %v89_v38, %v97_v39 }
  0x57   :  { %967 = vmatprep.subr.bf16.mxu0 %v1389_v50  ;;  %1008 = vmatprep.subr.bf16.mxu1 %v1391_v51  ;;  %v1393_v51 = vcombine.high %v105_v45, %v113_v46  ;;  %v1395_v52 = vcombine.high %v106_v47, %v114_v48 }
  0x5a   :  { %968 = vmatpush1.bf16.msra.mxu0 %v1388_v56  ;;  %1009 = vmatpush1.bf16.msra.mxu1 %v1390_v57  ;;  %v130_v56 = vld [vmem:[%s2023_s1 + $0x378] sm:$0xff]  ;;  %v1392_v57 = vcombine.low %v105_v45, %v113_v46 }
  0x5b   :  { %969 = vmatprep.subr.bf16.mxu0 %v1405_v58  ;;  %1010 = vmatprep.subr.bf16.mxu1 %v1407_v59  ;;  %v1394_v58 = vcombine.low %v106_v47, %v114_v48  ;;  %v1409_v59 = vcombine.high %v121_v53, %v129_v54  ;;  %v1411_v60 = vcombine.high %v122_v55, %v130_v56 }
  0x5e   :  { %970 = vmatpush1.bf16.msra.mxu0 %v1404_v0  ;;  %1011 = vmatpush1.bf16.msra.mxu1 %v1406_v1  ;;  %v146_v0 = vld [vmem:[%s2023_s1 + $0x3f8] sm:$0xff]  ;;  %v1408_v1 = vcombine.low %v121_v53, %v129_v54 }
  0x5f   :  { %971 = vmatprep.subr.bf16.mxu0 %v1421_v2  ;;  %1012 = vmatprep.subr.bf16.mxu1 %v1423_v4  ;;  %v1410_v2 = vcombine.low %v122_v55, %v130_v56  ;;  %v1425_v4 = vcombine.high %v137_v61, %v145_v62  ;;  %v1427_v5 = vcombine.high %v138_v63, %v146_v0 }
  0x60   :  { %v1426_v7 = vcombine.low %v138_v63, %v146_v0 }
  0x62   :  { %972 = vmatpush1.bf16.msra.mxu0 %v1420_v9  ;;  %1013 = vmatpush1.bf16.msra.mxu1 %v1422_v10  ;;  %v1897_v9 = vshrl.u32 %v1121_v8, 7 }
  0x63   :  { %1039 = vmatprep.subr.bf16.mxu0 %v1313_v11  ;;  %1080 = vmatprep.subr.bf16.mxu1 %v1315_v13  ;;  %v1904_v13 = vld [vmem:[%s2026_s3 + $0x8] sm:$0xff] }
  0x64   :  { %v1130_v10 = vsub.s32 0, %v1897_v9  ;;  %v1142_v11 = vsub.s32 3, %v1897_v9  ;;  %v1138_v14 = vsub.s32 2, %v1897_v9  ;;  %v1146_v17 = vsub.s32 4, %v1897_v9 }
  0x65   :  { %990 = vmatmul.mubr.bf16.vlgmr.msra.gmra.mrb[8].mxu0 %v1614_v12  ;;  %1031 = vmatmul.mubr.bf16.vlgmr.msra.gmra.mrb[8].mxu1 %v1614_v12  ;;  %vm1123_vm0 = vcmp.eq.s32.totalorder %v1897_v9, 0 }
  0x66   :  { %1040 = vmatpush1.bf16.msra.mxu0 %v1312_v18  ;;  %1081 = vmatpush1.bf16.msra.mxu1 %v1314_v19  ;;  %v1908_v15 = vrot.slane %v1904_v13, %v1130_v10  ;;  %v1911_v16 = vrot.slane %v1904_v13, %v1138_v14  ;;  %v1154_v18 = vsub.s32 6, %v1897_v9  ;;  %v1150_v19 = vsub.s32 5, %v1897_v9 }
  0x67   :  { %1041 = vmatprep.subr.bf16.mxu0 %v1329_v20  ;;  %1082 = vmatprep.subr.bf16.mxu1 %v1331_v21  ;;  %v1158_v20 = vsub.s32 7, %v1897_v9  ;;  %v1921_v21 = vrot.slane %v1904_v13, %v1146_v17  ;;  %v1143_v31 = vrot.slane %v1124_v25, %v1142_v11 }
  0x68   :  { %1071 = vmatprep.mubr.bf16.mxu0 %v1462_v3  ;;  %1112 = vmatprep.mubr.bf16.mxu1 %v1462_v3  ;;  %v90_v3 = vld [vmem:[%s2023_s1 + $0x238] sm:$0xff]  ;;  %v1924_v22 = vrot.slane %v1904_v13, %v1154_v18  ;;  %v1927_v23 = vrot.slane %v1904_v13, %v1150_v19 }
  0x69   :  { %v1379_v44 = vcombine.high %v90_v3, %v98_v40  ;;  %v1378_v50 = vcombine.low %v90_v3, %v98_v40  ;;  %v1930_v24 = vrot.slane %v1904_v13, %v1158_v20  ;;  %v1211_v40 = vsel %vm1123_vm0, %v1143_v31, 0.0 }
  0x6a   :  { %1042 = vmatpush1.bf16.msra.mxu0 %v1328_v26  ;;  %1083 = vmatpush1.bf16.msra.mxu1 %v1330_v27  ;;  %v1134_v26 = vsub.s32 1, %v1897_v9  ;;  %v1131_v27 = vrot.slane %v1124_v25, %v1130_v10 }
  0x6b   :  { %1043 = vmatprep.subr.bf16.mxu0 %v1345_v28  ;;  %1084 = vmatprep.subr.bf16.mxu1 %v1347_v29  ;;  %v1139_v29 = vrot.slane %v1124_v25, %v1138_v14 }
  0x6c   :  { %v1135_v28 = vrot.slane %v1124_v25, %v1134_v26  ;;  %v1208_v33 = vsel %vm1123_vm0, %v1131_v27, 0.0 }
  0x6d   :  { %v1210_v38 = vsel %vm1123_vm0, %v1139_v29, 0.0 }
  0x6e   :  { %1044 = vmatpush1.bf16.msra.mxu0 %v1344_v34  ;;  %1085 = vmatpush1.bf16.msra.mxu1 %v1346_v35 }
  0x6f   :  { %1045 = vmatprep.subr.bf16.mxu0 %v1361_v36  ;;  %1086 = vmatprep.subr.bf16.mxu1 %v1363_v37  ;;  %v1209_v36 = vsel %vm1123_vm0, %v1135_v28, 0.0 }
  0x72   :  { %1046 = vmatpush1.bf16.msra.mxu0 %v1360_v41  ;;  %1087 = vmatpush1.bf16.msra.mxu1 %v1362_v42 }
  0x73   :  { %1047 = vmatprep.subr.bf16.mxu0 %v1377_v43  ;;  %1088 = vmatprep.subr.bf16.mxu1 %v1379_v44 }
  0x76   :  { %1048 = vmatpush1.bf16.msra.mxu0 %v1376_v49  ;;  %1089 = vmatpush1.bf16.msra.mxu1 %v1378_v50 }
  0x77   :  { %1049 = vmatprep.subr.bf16.mxu0 %v1393_v51  ;;  %1090 = vmatprep.subr.bf16.mxu1 %v1395_v52 }
  0x7a   :  { %1050 = vmatpush1.bf16.msra.mxu0 %v1392_v57  ;;  %1091 = vmatpush1.bf16.msra.mxu1 %v1394_v58  ;;  %v1147_v57 = vrot.slane %v1124_v25, %v1146_v17  ;;  %v1155_v58 = vrot.slane %v1124_v25, %v1154_v18 }
  0x7b   :  { %1051 = vmatprep.subr.bf16.mxu0 %v1409_v59  ;;  %1092 = vmatprep.subr.bf16.mxu1 %v1411_v60  ;;  %v1151_v59 = vrot.slane %v1124_v25, %v1150_v19  ;;  %v1159_v60 = vrot.slane %v1124_v25, %v1158_v20 }
  0x7c   :  { %v1212_v62 = vsel %vm1123_vm0, %v1147_v57, 0.0  ;;  %v1220_v57 = vsel %vm1123_vm0, %v1921_v21, 0.0  ;;  %v1223_v21 = vsel %vm1123_vm0, %v1930_v24, 0.0 }
  0x7d   :  { %v1215_v8 = vsel %vm1123_vm0, %v1159_v60, 0.0  ;;  %v1222_v60 = vsel %vm1123_vm0, %v1924_v22, 0.0 }
  0x7e   :  { %1052 = vmatpush1.bf16.msra.mxu0 %v1408_v1  ;;  %1093 = vmatpush1.bf16.msra.mxu1 %v1410_v2  ;;  %v1214_v1 = vsel %vm1123_vm0, %v1155_v58, 0.0 }
  0x7f   :  { %1053 = vmatprep.subr.bf16.mxu0 %v1425_v4  ;;  %1094 = vmatprep.subr.bf16.mxu1 %v1427_v5  ;;  %v1213_v4 = vsel %vm1123_vm0, %v1151_v59, 0.0 }
  0x82   :  { %1054 = vmatpush1.bf16.msra.mxu0 %v1424_v6  ;;  %1095 = vmatpush1.bf16.msra.mxu1 %v1426_v7 }
  0x85   :  { %1072 = vmatmul.mubr.bf16.vlgmr.msra.gmra.mrb[12].mxu0 %v1614_v12  ;;  %1113 = vmatmul.mubr.bf16.vlgmr.msra.gmra.mrb[12].mxu1 %v1614_v12  ;;  %v1914_v12 = vrot.slane %v1904_v13, %v1142_v11 }
  0x93   :  { %v1939_v30 = vpop.permute.xlu0 %150 }
  0xf8   :  { %v827_v32 = vpop.f32.mrb[0].mxu0  ;;  %v868_v34 = vpop.f32.mrb[0].mxu1 }
  0xf9   :  { %v829_v35 = vpop.f32.mrb[1].mxu0  ;;  %v828_v37 = vadd.f32 %v827_v32, %v1939_v30  ;;  %v870_v3 = vpop.f32.mrb[1].mxu1  ;;  %v869_v42 = vadd.f32 %v868_v34, %v1939_v30 }
  0xfa   :  { %v830_v39 = vadd.f32 %v829_v35, %v1939_v30  ;;  %v831_v41 = vpop.f32.mrb[2].mxu0  ;;  %v871_v43 = vadd.f32 %v870_v3, %v1939_v30  ;;  %v872_v44 = vpop.f32.mrb[2].mxu1  ;;  %v1167_v35 = vrot.slane %v1904_v13, %v1134_v26  ;;  %v1218_v3 = vsel %vm1123_vm0, %v1911_v16, 0.0 }
  0xfb   :  { %v832_v45 = vpop.f32.mrb[3].mxu0  ;;  %v1224_v46 = vadd.f32 %v1208_v33, %v828_v37  ;;  %v873_v48 = vpop.f32.mrb[3].mxu1  ;;  %v1226_v49 = vadd.f32 %v1210_v38, %v869_v42  ;;  %v1216_v37 = vsel %vm1123_vm0, %v1908_v15, 0.0  ;;  %v1219_v15 = vsel %vm1123_vm0, %v1914_v12, 0.0 }
  0xfc   :  { %v1225_v47 = vadd.f32 %v1209_v36, %v830_v39  ;;  %v1227_v50 = vadd.f32 %v1211_v40, %v871_v43  ;;  %v1217_v41 = vsel %vm1123_vm0, %v1167_v35, 0.0 }
  0xfd   :  { %1430 = vtanh.f32 %v1224_v46 }
  0xfe   :  { %1432 = vtanh.f32 %v1225_v47 }
  0xff   :  { %1434 = vtanh.f32 %v1227_v50 }
 0x100   :  { %1436 = vtanh.f32 %v1226_v49 }
 0x107   :  { %v1431_v51 = vpop.eup %1430 }
 0x108   :  { %v1433_v52 = vpop.eup %1432 }
 0x109   :  { %v1435_v53 = vpop.eup %1434  ;;  %v1272_v54 = vcombine.low %v1431_v51, %v1433_v52 }
 0x10a   :  { %v1437_v55 = vpop.eup %1436 }
 0x10b   :  { %1288 = vst [vmem:[%s2027_s4] sm:$0x77] %v1272_v54  ;;  %v1273_v56 = vcombine.low %v1437_v55, %v1435_v53 }
 0x10d   :  { %1289 = vst [vmem:[%s2027_s4 + $0x8] sm:$0x77] %v1273_v56 }
 0x118   :  { %v909_v61 = vpop.f32.mrb[4].mxu0  ;;  %v950_v0 = vpop.f32.mrb[4].mxu1 }
 0x119   :  { %v910_v63 = vadd.f32 %v909_v61, %v1939_v30  ;;  %v911_v2 = vpop.f32.mrb[5].mxu0  ;;  %v951_v5 = vadd.f32 %v950_v0, %v1939_v30  ;;  %v952_v7 = vpop.f32.mrb[5].mxu1 }
 0x11a   :  { %v912_v6 = vadd.f32 %v911_v2, %v1939_v30  ;;  %v913_v10 = vpop.f32.mrb[6].mxu0  ;;  %v953_v14 = vadd.f32 %v952_v7, %v1939_v30  ;;  %v954_v17 = vpop.f32.mrb[6].mxu1 }
 0x11b   :  { %v1228_v11 = vadd.f32 %v1212_v62, %v910_v63  ;;  %v914_v18 = vpop.f32.mrb[7].mxu0  ;;  %v1230_v19 = vadd.f32 %v1214_v1, %v951_v5  ;;  %v955_v25 = vpop.f32.mrb[7].mxu1  ;;  %v1221_v62 = vsel %vm1123_vm0, %v1927_v23, 0.0 }
 0x11c   :  { %v1229_v20 = vadd.f32 %v1213_v4, %v912_v6  ;;  %v1231_v27 = vadd.f32 %v1215_v8, %v953_v14 }
 0x11d   :  { %1438 = vtanh.f32 %v1228_v11 }
 0x11e   :  { %1440 = vtanh.f32 %v1230_v19 }
 0x11f   :  { %1442 = vtanh.f32 %v1229_v20 }
 0x120   :  { %1444 = vtanh.f32 %v1231_v27 }
 0x127   :  { %v1439_v28 = vpop.eup %1438 }
 0x128   :  { %v1441_v29 = vpop.eup %1440 }
 0x129   :  { %v1443_v31 = vpop.eup %1442 }
 0x12a   :  { %v1445_v32 = vpop.eup %1444  ;;  %v1274_v33 = vcombine.low %v1439_v28, %v1443_v31 }
 0x12b   :  { %v1275_v34 = vcombine.low %v1441_v29, %v1445_v32 }
 0x12c   :  { %1290 = vst [vmem:[%s2027_s4 + $0x10] sm:$0x77] %v1274_v33 }
 0x12d   :  { %1291 = vst [vmem:[%s2027_s4 + $0x18] sm:$0x77] %v1275_v34 }
 0x138   :  { %v991_v36 = vpop.f32.mrb[8].mxu0  ;;  %v1032_v39 = vpop.f32.mrb[8].mxu1 }
 0x139   :  { %v992_v38 = vadd.f32 %v991_v36, %v1939_v30  ;;  %v993_v40 = vpop.f32.mrb[9].mxu0  ;;  %v1033_v42 = vadd.f32 %v1032_v39, %v1939_v30  ;;  %v1034_v26 = vpop.f32.mrb[9].mxu1 }
 0x13a   :  { %v994_v13 = vadd.f32 %v993_v40, %v1939_v30  ;;  %v995_v43 = vpop.f32.mrb[10].mxu0  ;;  %v1035_v45 = vadd.f32 %v1034_v26, %v1939_v30  ;;  %v1036_v46 = vpop.f32.mrb[10].mxu1 }
 0x13b   :  { %v1232_v44 = vadd.f32 %v1216_v37, %v992_v38  ;;  %v996_v47 = vpop.f32.mrb[11].mxu0  ;;  %v1234_v16 = vadd.f32 %v1218_v3, %v1033_v42  ;;  %v1037_v49 = vpop.f32.mrb[11].mxu1 }
 0x13c   :  { %v1233_v48 = vadd.f32 %v1217_v41, %v994_v13  ;;  %v1235_v50 = vadd.f32 %v1219_v15, %v1035_v45 }
 0x13d   :  { %1446 = vtanh.f32 %v1232_v44 }
 0x13e   :  { %1448 = vtanh.f32 %v1234_v16 }
 0x13f   :  { %1450 = vtanh.f32 %v1233_v48 }
 0x140   :  { %1452 = vtanh.f32 %v1235_v50 }
 0x147   :  { %v1447_v51 = vpop.eup %1446 }
 0x148   :  { %v1449_v52 = vpop.eup %1448 }
 0x149   :  { %v1451_v53 = vpop.eup %1450 }
 0x14a   :  { %v1453_v54 = vpop.eup %1452  ;;  %v1276_v55 = vcombine.low %v1447_v51, %v1451_v53 }
 0x14b   :  { %v1277_v12 = vcombine.low %v1449_v52, %v1453_v54 }
 0x14c   :  { %1292 = vst [vmem:[%s2027_s4 + $0x20] sm:$0x77] %v1276_v55 }
 0x14d   :  { %1293 = vst [vmem:[%s2027_s4 + $0x28] sm:$0x77] %v1277_v12 }
 0x158   :  { %v1073_v56 = vpop.f32.mrb[12].mxu0  ;;  %v1114_v59 = vpop.f32.mrb[12].mxu1 }
 0x159   :  { %v1074_v58 = vadd.f32 %v1073_v56, %v1939_v30  ;;  %v1075_v61 = vpop.f32.mrb[13].mxu0  ;;  %v1115_v63 = vadd.f32 %v1114_v59, %v1939_v30  ;;  %v1116_v1 = vpop.f32.mrb[13].mxu1 }
 0x15a   :  { %v1076_v0 = vadd.f32 %v1075_v61, %v1939_v30  ;;  %v1077_v2 = vpop.f32.mrb[14].mxu0  ;;  %v1117_v5 = vadd.f32 %v1116_v1, %v1939_v30  ;;  %v1118_v6 = vpop.f32.mrb[14].mxu1 }
 0x15b   :  { %v1236_v4 = vadd.f32 %v1220_v57, %v1074_v58  ;;  %v1078_v22 = vpop.f32.mrb[15].mxu0  ;;  %v1238_v7 = vadd.f32 %v1222_v60, %v1115_v63  ;;  %v1119_v10 = vpop.f32.mrb[15].mxu1 }
 0x15c   :  { %v1237_v8 = vadd.f32 %v1221_v62, %v1076_v0  ;;  %v1239_v23 = vadd.f32 %v1223_v21, %v1117_v5 }
 0x15d   :  { %1454 = vtanh.f32 %v1236_v4 }
 0x15e   :  { %1456 = vtanh.f32 %v1238_v7 }
 0x15f   :  { %1458 = vtanh.f32 %v1237_v8 }
 0x160   :  { %1460 = vtanh.f32 %v1239_v23 }
 0x167   :  { %v1455_v11 = vpop.eup %1454 }
 0x168   :  { %v1457_v14 = vpop.eup %1456 }
 0x169   :  { %v1459_v17 = vpop.eup %1458 }
 0x16a   :  { %v1461_v18 = vpop.eup %1460  ;;  %v1278_v9 = vcombine.low %v1455_v11, %v1459_v17 }
 0x16b   :  { %v1279_v24 = vcombine.low %v1457_v14, %v1461_v18 }
 0x16c   :  { %1294 = vst [vmem:[%s2027_s4 + $0x30] sm:$0x77] %v1278_v9 }
 0x16d   :  { %1295 = vst [vmem:[%s2027_s4 + $0x38] sm:$0x77] %v1279_v24 }

</bundles_post_ra>
